<compile_context>
chip_gen: v7x
topology: tpu7x:2x2x1
jax: 0.10.0
libtpu: 0.0.40
codegen_flags: <defaults>
</compile_context>

<pallas_src>
import functools

import jax
import jax.numpy as jnp
from jax.experimental import pallas as pl
from jax.experimental.pallas import tpu as pltpu

C_IN, C_OUT, K, STRIDE, PAD = 4, 2, 3, 2, 1


def _pick_batch_block(n):
    """Largest divisor of n that still leaves >=2 grid steps (capped at 4)."""
    cap = min(4, n // 2) if n >= 2 else 1
    for nb in range(max(cap, 1), 0, -1):
        if n % nb == 0:
            return nb
    return 1


def _convt_hardsig_kernel(x_ref, w_ref, b_ref, o_ref, *, h, w, nb):
    # x_ref: (nb, C_IN, H, W)  input block in VMEM (compact, no zero-upsample)
    # w_ref: (C_IN*C_OUT*K*K,) weights in SMEM, row-major (ic, oc, kh, kw), unflipped
    # b_ref: (C_OUT,)          bias in SMEM
    # o_ref: (nb, C_OUT, 2, 2, H, W)  phase-separated output planes
    #        [b, oc, rp, cp, i, j]  ->  y[b, oc, 2*i+rp, 2*j+cp]
    H, W = h, w

    def wgt(ic, oc, kh, kw):
        return w_ref[((ic * C_OUT + oc) * K + kh) * K + kw]

    def hardsig(v):
        return jnp.clip(v + 3.0, 0.0, 6.0) * (1.0 / 6.0)

    # ---- phase (even row, even col): y[2i, 2j] -- only tap (kh=1, kw=1) ----
    acc = [jnp.full((nb, H, W), b_ref[oc], jnp.float32) for oc in range(C_OUT)]
    for ic in range(C_IN):
        x00 = x_ref[:, ic, :, :].astype(jnp.float32)                # x[i, j]
        for oc in range(C_OUT):
            acc[oc] = acc[oc] + x00 * wgt(ic, oc, 1, 1)
    for oc in range(C_OUT):
        o_ref[:, oc, 0, 0, :, :] = hardsig(acc[oc]).astype(o_ref.dtype)

    # ---- phase (even row, odd col): y[2i, 2j+1] -- taps (1,2) & (1,0) ----
    acc = [jnp.full((nb, H, W - 1), b_ref[oc], jnp.float32) for oc in range(C_OUT)]
    for ic in range(C_IN):
        xl = x_ref[:, ic, :, 0:W - 1].astype(jnp.float32)           # x[i, j]
        xr = x_ref[:, ic, :, 1:W].astype(jnp.float32)               # x[i, j+1]
        for oc in range(C_OUT):
            acc[oc] = acc[oc] + xl * wgt(ic, oc, 1, 2) + xr * wgt(ic, oc, 1, 0)
    for oc in range(C_OUT):
        o_ref[:, oc, 0, 1, :, 0:W - 1] = hardsig(acc[oc]).astype(o_ref.dtype)

    # ---- phase (odd row, even col): y[2i+1, 2j] -- taps (2,1) & (0,1) ----
    acc = [jnp.full((nb, H - 1, W), b_ref[oc], jnp.float32) for oc in range(C_OUT)]
    for ic in range(C_IN):
        xt = x_ref[:, ic, 0:H - 1, :].astype(jnp.float32)           # x[i,   j]
        xb = x_ref[:, ic, 1:H, :].astype(jnp.float32)               # x[i+1, j]
        for oc in range(C_OUT):
            acc[oc] = acc[oc] + xt * wgt(ic, oc, 2, 1) + xb * wgt(ic, oc, 0, 1)
    for oc in range(C_OUT):
        o_ref[:, oc, 1, 0, 0:H - 1, :] = hardsig(acc[oc]).astype(o_ref.dtype)

    # ---- phase (odd row, odd col): y[2i+1, 2j+1] -- taps (2,2),(2,0),(0,2),(0,0) ----
    acc = [jnp.full((nb, H - 1, W - 1), b_ref[oc], jnp.float32) for oc in range(C_OUT)]
    for ic in range(C_IN):
        xtl = x_ref[:, ic, 0:H - 1, 0:W - 1].astype(jnp.float32)    # x[i,   j]
        xtr = x_ref[:, ic, 0:H - 1, 1:W].astype(jnp.float32)        # x[i,   j+1]
        xbl = x_ref[:, ic, 1:H, 0:W - 1].astype(jnp.float32)        # x[i+1, j]
        xbr = x_ref[:, ic, 1:H, 1:W].astype(jnp.float32)            # x[i+1, j+1]
        for oc in range(C_OUT):
            acc[oc] = (acc[oc]
                       + xtl * wgt(ic, oc, 2, 2) + xtr * wgt(ic, oc, 2, 0)
                       + xbl * wgt(ic, oc, 0, 2) + xbr * wgt(ic, oc, 0, 0))
    for oc in range(C_OUT):
        o_ref[:, oc, 1, 1, 0:H - 1, 0:W - 1] = hardsig(acc[oc]).astype(o_ref.dtype)


@jax.jit
def model_forward(x, weight, bias):
    """x: (N, C_IN, H, W) f32; weight: (C_IN, C_OUT, K, K); bias: (C_OUT,)."""
    n, c, h, w = x.shape
    assert c == C_IN and h >= 2 and w >= 2
    ho = (h - 1) * STRIDE - 2 * PAD + K          # = 2h - 1
    wo = (w - 1) * STRIDE - 2 * PAD + K          # = 2w - 1

    nb = _pick_batch_block(n)
    w_flat = weight.reshape(-1)                  # (ic, oc, kh, kw) row-major, unflipped

    kernel = functools.partial(_convt_hardsig_kernel, h=h, w=w, nb=nb)
    phases = pl.pallas_call(
        kernel,
        out_shape=jax.ShapeDtypeStruct((n, C_OUT, 2, 2, h, w), x.dtype),
        grid=(n // nb,),
        in_specs=[
            pl.BlockSpec((nb, C_IN, h, w), lambda i: (i, 0, 0, 0)),
            pl.BlockSpec(memory_space=pltpu.MemorySpace.SMEM),
            pl.BlockSpec(memory_space=pltpu.MemorySpace.SMEM),
        ],
        out_specs=pl.BlockSpec((nb, C_OUT, 2, 2, h, w),
                               lambda i: (i, 0, 0, 0, 0, 0)),
        compiler_params=pltpu.CompilerParams(
            dimension_semantics=("parallel",),
            vmem_limit_bytes=32 * 1024 * 1024,
        ),
    )(x, w_flat, bias)

    # Interleave the four stride-2 phases into the dense output (single fused
    # output-sized layout pass under jit; the dropped last row/col were never
    # valid output positions).
    y = phases.transpose(0, 1, 4, 2, 5, 3).reshape(n, C_OUT, 2 * h, 2 * w)
    return y[:, :, :ho, :wo]


if __name__ == "__main__":
    key = jax.random.PRNGKey(0)
    kx, kwt, kb = jax.random.split(key, 3)

    # Small shapes consistent with the module (original was (8, 4, 64, 64)).
    N, H, W = 2, 16, 16
    x = jax.random.normal(kx, (N, C_IN, H, W), jnp.float32)

    # Deterministic parameter init (uniform, PyTorch-default-like scale).
    fan = C_IN * K * K
    bound = 1.0 / (fan ** 0.5)
    weight = jax.random.uniform(kwt, (C_IN, C_OUT, K, K), jnp.float32, -bound, bound)
    bias = jax.random.uniform(kb, (C_OUT,), jnp.float32, -bound, bound)

    out = jax.block_until_ready(model_forward(x, weight, bias))

    # Reference: transposed conv via lhs-dilated correlation with flipped kernel.
    w_oihw = jnp.transpose(weight[:, :, ::-1, ::-1], (1, 0, 2, 3))  # (C_OUT, C_IN, K, K)
    conv = jax.lax.conv_general_dilated(
        x, w_oihw, window_strides=(1, 1),
        padding=[(K - 1 - PAD, K - 1 - PAD)] * 2,
        lhs_dilation=(STRIDE, STRIDE),
        dimension_numbers=("NCHW", "OIHW", "NCHW"),
        precision=jax.lax.Precision.HIGHEST)
    ref = jnp.clip(conv + bias[None, :, None, None] + 3.0, 0.0, 6.0) / 6.0

    assert out.shape == (N, C_OUT, 2 * H - 1, 2 * W - 1)
    assert jnp.allclose(out, ref, atol=1e-4, rtol=1e-4), "mismatch vs reference"
    print("KERNEL_OK")
</pallas_src>

<mosaic_0001>
module attributes {stable_mosaic.version = 11 : i64} {
  func.func @_convt_hardsig_kernel(%arg0: i32, %arg1: memref<1x4x16x16xf32, #tpu.memory_space<vmem>>, %arg2: memref<72xf32, #tpu.memory_space<smem>>, %arg3: memref<2xf32, #tpu.memory_space<smem>>, %arg4: memref<1x2x2x2x16x16xf32, #tpu.memory_space<vmem>>) attributes {dimension_semantics = [#tpu.dimension_semantics<parallel>], iteration_bounds = array<i64: 2>, scalar_prefetch = 0 : i64, scratch_operands = 0 : i64, tpu.core_type = #tpu.core_type<tc>, window_params = [{transform_indices = @transform_0, window_bounds = array<i64: 1, 4, 16, 16>}, {transform_indices = @transform_1, window_bounds = array<i64: 72>}, {transform_indices = @transform_2, window_bounds = array<i64: 2>}, {transform_indices = @transform_3, window_bounds = array<i64: 1, 2, 2, 2, 16, 16>}]} {
    %c0 = arith.constant 0 : index
    %0 = memref.load %arg3[%c0] : memref<2xf32, #tpu.memory_space<smem>>
    %1 = vector.broadcast %0 : f32 to vector<1x16x16xf32>
    %c1 = arith.constant 1 : index
    %2 = memref.load %arg3[%c1] : memref<2xf32, #tpu.memory_space<smem>>
    %3 = vector.broadcast %2 : f32 to vector<1x16x16xf32>
    %c0_0 = arith.constant 0 : index
    %c0_1 = arith.constant 0 : index
    %c0_2 = arith.constant 0 : index
    %c0_3 = arith.constant 0 : index
    %4 = vector.load %arg1[%c0_0, %c0_1, %c0_2, %c0_3] : memref<1x4x16x16xf32, #tpu.memory_space<vmem>>, vector<1x1x16x16xf32>
    %5 = vector.shape_cast %4 : vector<1x1x16x16xf32> to vector<1x16x16xf32>
    %c4 = arith.constant 4 : index
    %6 = memref.load %arg2[%c4] : memref<72xf32, #tpu.memory_space<smem>>
    %7 = vector.broadcast %6 : f32 to vector<1x16x16xf32>
    %8 = arith.mulf %5, %7 : vector<1x16x16xf32>
    %9 = arith.addf %1, %8 : vector<1x16x16xf32>
    %c13 = arith.constant 13 : index
    %10 = memref.load %arg2[%c13] : memref<72xf32, #tpu.memory_space<smem>>
    %11 = vector.broadcast %10 : f32 to vector<1x16x16xf32>
    %12 = arith.mulf %5, %11 : vector<1x16x16xf32>
    %13 = arith.addf %3, %12 : vector<1x16x16xf32>
    %c0_4 = arith.constant 0 : index
    %c1_5 = arith.constant 1 : index
    %c0_6 = arith.constant 0 : index
    %c0_7 = arith.constant 0 : index
    %14 = vector.load %arg1[%c0_4, %c1_5, %c0_6, %c0_7] : memref<1x4x16x16xf32, #tpu.memory_space<vmem>>, vector<1x1x16x16xf32>
    %15 = vector.shape_cast %14 : vector<1x1x16x16xf32> to vector<1x16x16xf32>
    %c22 = arith.constant 22 : index
    %16 = memref.load %arg2[%c22] : memref<72xf32, #tpu.memory_space<smem>>
    %17 = vector.broadcast %16 : f32 to vector<1x16x16xf32>
    %18 = arith.mulf %15, %17 : vector<1x16x16xf32>
    %19 = arith.addf %9, %18 : vector<1x16x16xf32>
    %c31 = arith.constant 31 : index
    %20 = memref.load %arg2[%c31] : memref<72xf32, #tpu.memory_space<smem>>
    %21 = vector.broadcast %20 : f32 to vector<1x16x16xf32>
    %22 = arith.mulf %15, %21 : vector<1x16x16xf32>
    %23 = arith.addf %13, %22 : vector<1x16x16xf32>
    %c0_8 = arith.constant 0 : index
    %c2 = arith.constant 2 : index
    %c0_9 = arith.constant 0 : index
    %c0_10 = arith.constant 0 : index
    %24 = vector.load %arg1[%c0_8, %c2, %c0_9, %c0_10] : memref<1x4x16x16xf32, #tpu.memory_space<vmem>>, vector<1x1x16x16xf32>
    %25 = vector.shape_cast %24 : vector<1x1x16x16xf32> to vector<1x16x16xf32>
    %c40 = arith.constant 40 : index
    %26 = memref.load %arg2[%c40] : memref<72xf32, #tpu.memory_space<smem>>
    %27 = vector.broadcast %26 : f32 to vector<1x16x16xf32>
    %28 = arith.mulf %25, %27 : vector<1x16x16xf32>
    %29 = arith.addf %19, %28 : vector<1x16x16xf32>
    %c49 = arith.constant 49 : index
    %30 = memref.load %arg2[%c49] : memref<72xf32, #tpu.memory_space<smem>>
    %31 = vector.broadcast %30 : f32 to vector<1x16x16xf32>
    %32 = arith.mulf %25, %31 : vector<1x16x16xf32>
    %33 = arith.addf %23, %32 : vector<1x16x16xf32>
    %c0_11 = arith.constant 0 : index
    %c3 = arith.constant 3 : index
    %c0_12 = arith.constant 0 : index
    %c0_13 = arith.constant 0 : index
    %34 = vector.load %arg1[%c0_11, %c3, %c0_12, %c0_13] : memref<1x4x16x16xf32, #tpu.memory_space<vmem>>, vector<1x1x16x16xf32>
    %35 = vector.shape_cast %34 : vector<1x1x16x16xf32> to vector<1x16x16xf32>
    %c58 = arith.constant 58 : index
    %36 = memref.load %arg2[%c58] : memref<72xf32, #tpu.memory_space<smem>>
    %37 = vector.broadcast %36 : f32 to vector<1x16x16xf32>
    %38 = arith.mulf %35, %37 : vector<1x16x16xf32>
    %39 = arith.addf %29, %38 : vector<1x16x16xf32>
    %c67 = arith.constant 67 : index
    %40 = memref.load %arg2[%c67] : memref<72xf32, #tpu.memory_space<smem>>
    %41 = vector.broadcast %40 : f32 to vector<1x16x16xf32>
    %42 = arith.mulf %35, %41 : vector<1x16x16xf32>
    %43 = arith.addf %33, %42 : vector<1x16x16xf32>
    %cst = arith.constant 3.000000e+00 : f32
    %44 = vector.broadcast %cst : f32 to vector<1x16x16xf32>
    %45 = arith.addf %39, %44 : vector<1x16x16xf32>
    %cst_14 = arith.constant 0.000000e+00 : f32
    %cst_15 = arith.constant 6.000000e+00 : f32
    %46 = vector.broadcast %cst_14 : f32 to vector<1x16x16xf32>
    %47 = arith.maximumf %46, %45 : vector<1x16x16xf32>
    %48 = vector.broadcast %cst_15 : f32 to vector<1x16x16xf32>
    %49 = arith.minimumf %48, %47 : vector<1x16x16xf32>
    %cst_16 = arith.constant 0.166666672 : f32
    %50 = vector.broadcast %cst_16 : f32 to vector<1x16x16xf32>
    %51 = arith.mulf %49, %50 : vector<1x16x16xf32>
    %c0_17 = arith.constant 0 : index
    %c0_18 = arith.constant 0 : index
    %c0_19 = arith.constant 0 : index
    %c0_20 = arith.constant 0 : index
    %c0_21 = arith.constant 0 : index
    %c0_22 = arith.constant 0 : index
    %52 = vector.load %arg4[%c0_17, %c0_18, %c0_19, %c0_20, %c0_21, %c0_22] : memref<1x2x2x2x16x16xf32, #tpu.memory_space<vmem>>, vector<1x1x1x1x16x16xf32>
    %53 = vector.shape_cast %52 : vector<1x1x1x1x16x16xf32> to vector<1x16x16xf32>
    %54 = vector.shape_cast %51 : vector<1x16x16xf32> to vector<1x1x1x1x16x16xf32>
    tpu.vector_store %arg4[%c0_17, %c0_18, %c0_19, %c0_20, %c0_21, %c0_22], %54 {strides = array<i32>} : memref<1x2x2x2x16x16xf32, #tpu.memory_space<vmem>>, vector<1x1x1x1x16x16xf32>,
    %cst_23 = arith.constant 3.000000e+00 : f32
    %55 = vector.broadcast %cst_23 : f32 to vector<1x16x16xf32>
    %56 = arith.addf %43, %55 : vector<1x16x16xf32>
    %cst_24 = arith.constant 0.000000e+00 : f32
    %cst_25 = arith.constant 6.000000e+00 : f32
    %57 = vector.broadcast %cst_24 : f32 to vector<1x16x16xf32>
    %58 = arith.maximumf %57, %56 : vector<1x16x16xf32>
    %59 = vector.broadcast %cst_25 : f32 to vector<1x16x16xf32>
    %60 = arith.minimumf %59, %58 : vector<1x16x16xf32>
    %cst_26 = arith.constant 0.166666672 : f32
    %61 = vector.broadcast %cst_26 : f32 to vector<1x16x16xf32>
    %62 = arith.mulf %60, %61 : vector<1x16x16xf32>
    %c0_27 = arith.constant 0 : index
    %c1_28 = arith.constant 1 : index
    %c0_29 = arith.constant 0 : index
    %c0_30 = arith.constant 0 : index
    %c0_31 = arith.constant 0 : index
    %c0_32 = arith.constant 0 : index
    %63 = vector.load %arg4[%c0_27, %c1_28, %c0_29, %c0_30, %c0_31, %c0_32] : memref<1x2x2x2x16x16xf32, #tpu.memory_space<vmem>>, vector<1x1x1x1x16x16xf32>
    %64 = vector.shape_cast %63 : vector<1x1x1x1x16x16xf32> to vector<1x16x16xf32>
    %65 = vector.shape_cast %62 : vector<1x16x16xf32> to vector<1x1x1x1x16x16xf32>
    tpu.vector_store %arg4[%c0_27, %c1_28, %c0_29, %c0_30, %c0_31, %c0_32], %65 {strides = array<i32>} : memref<1x2x2x2x16x16xf32, #tpu.memory_space<vmem>>, vector<1x1x1x1x16x16xf32>,
    %c0_33 = arith.constant 0 : index
    %66 = memref.load %arg3[%c0_33] : memref<2xf32, #tpu.memory_space<smem>>
    %67 = vector.broadcast %66 : f32 to vector<1x16x15xf32>
    %c1_34 = arith.constant 1 : index
    %68 = memref.load %arg3[%c1_34] : memref<2xf32, #tpu.memory_space<smem>>
    %69 = vector.broadcast %68 : f32 to vector<1x16x15xf32>
    %c0_35 = arith.constant 0 : index
    %c0_36 = arith.constant 0 : index
    %c0_37 = arith.constant 0 : index
    %c0_38 = arith.constant 0 : index
    %70 = vector.load %arg1[%c0_35, %c0_36, %c0_37, %c0_38] : memref<1x4x16x16xf32, #tpu.memory_space<vmem>>, vector<1x1x16x15xf32>
    %71 = vector.shape_cast %70 : vector<1x1x16x15xf32> to vector<1x16x15xf32>
    %c0_39 = arith.constant 0 : index
    %c0_40 = arith.constant 0 : index
    %c0_41 = arith.constant 0 : index
    %c1_42 = arith.constant 1 : index
    %72 = vector.load %arg1[%c0_39, %c0_40, %c0_41, %c1_42] : memref<1x4x16x16xf32, #tpu.memory_space<vmem>>, vector<1x1x16x15xf32>
    %73 = vector.shape_cast %72 : vector<1x1x16x15xf32> to vector<1x16x15xf32>
    %c5 = arith.constant 5 : index
    %74 = memref.load %arg2[%c5] : memref<72xf32, #tpu.memory_space<smem>>
    %75 = vector.broadcast %74 : f32 to vector<1x16x15xf32>
    %76 = arith.mulf %71, %75 : vector<1x16x15xf32>
    %77 = arith.addf %67, %76 : vector<1x16x15xf32>
    %c3_43 = arith.constant 3 : index
    %78 = memref.load %arg2[%c3_43] : memref<72xf32, #tpu.memory_space<smem>>
    %79 = vector.broadcast %78 : f32 to vector<1x16x15xf32>
    %80 = arith.mulf %73, %79 : vector<1x16x15xf32>
    %81 = arith.addf %77, %80 : vector<1x16x15xf32>
    %c14 = arith.constant 14 : index
    %82 = memref.load %arg2[%c14] : memref<72xf32, #tpu.memory_space<smem>>
    %83 = vector.broadcast %82 : f32 to vector<1x16x15xf32>
    %84 = arith.mulf %71, %83 : vector<1x16x15xf32>
    %85 = arith.addf %69, %84 : vector<1x16x15xf32>
    %c12 = arith.constant 12 : index
    %86 = memref.load %arg2[%c12] : memref<72xf32, #tpu.memory_space<smem>>
    %87 = vector.broadcast %86 : f32 to vector<1x16x15xf32>
    %88 = arith.mulf %73, %87 : vector<1x16x15xf32>
    %89 = arith.addf %85, %88 : vector<1x16x15xf32>
    %c0_44 = arith.constant 0 : index
    %c1_45 = arith.constant 1 : index
    %c0_46 = arith.constant 0 : index
    %c0_47 = arith.constant 0 : index
    %90 = vector.load %arg1[%c0_44, %c1_45, %c0_46, %c0_47] : memref<1x4x16x16xf32, #tpu.memory_space<vmem>>, vector<1x1x16x15xf32>
    %91 = vector.shape_cast %90 : vector<1x1x16x15xf32> to vector<1x16x15xf32>
    %c0_48 = arith.constant 0 : index
    %c1_49 = arith.constant 1 : index
    %c0_50 = arith.constant 0 : index
    %c1_51 = arith.constant 1 : index
    %92 = vector.load %arg1[%c0_48, %c1_49, %c0_50, %c1_51] : memref<1x4x16x16xf32, #tpu.memory_space<vmem>>, vector<1x1x16x15xf32>
    %93 = vector.shape_cast %92 : vector<1x1x16x15xf32> to vector<1x16x15xf32>
    %c23 = arith.constant 23 : index
    %94 = memref.load %arg2[%c23] : memref<72xf32, #tpu.memory_space<smem>>
    %95 = vector.broadcast %94 : f32 to vector<1x16x15xf32>
    %96 = arith.mulf %91, %95 : vector<1x16x15xf32>
    %97 = arith.addf %81, %96 : vector<1x16x15xf32>
    %c21 = arith.constant 21 : index
    %98 = memref.load %arg2[%c21] : memref<72xf32, #tpu.memory_space<smem>>
    %99 = vector.broadcast %98 : f32 to vector<1x16x15xf32>
    %100 = arith.mulf %93, %99 : vector<1x16x15xf32>
    %101 = arith.addf %97, %100 : vector<1x16x15xf32>
    %c32 = arith.constant 32 : index
    %102 = memref.load %arg2[%c32] : memref<72xf32, #tpu.memory_space<smem>>
    %103 = vector.broadcast %102 : f32 to vector<1x16x15xf32>
    %104 = arith.mulf %91, %103 : vector<1x16x15xf32>
    %105 = arith.addf %89, %104 : vector<1x16x15xf32>
    %c30 = arith.constant 30 : index
    %106 = memref.load %arg2[%c30] : memref<72xf32, #tpu.memory_space<smem>>
    %107 = vector.broadcast %106 : f32 to vector<1x16x15xf32>
    %108 = arith.mulf %93, %107 : vector<1x16x15xf32>
    %109 = arith.addf %105, %108 : vector<1x16x15xf32>
    %c0_52 = arith.constant 0 : index
    %c2_53 = arith.constant 2 : index
    %c0_54 = arith.constant 0 : index
    %c0_55 = arith.constant 0 : index
    %110 = vector.load %arg1[%c0_52, %c2_53, %c0_54, %c0_55] : memref<1x4x16x16xf32, #tpu.memory_space<vmem>>, vector<1x1x16x15xf32>
    %111 = vector.shape_cast %110 : vector<1x1x16x15xf32> to vector<1x16x15xf32>
    %c0_56 = arith.constant 0 : index
    %c2_57 = arith.constant 2 : index
    %c0_58 = arith.constant 0 : index
    %c1_59 = arith.constant 1 : index
    %112 = vector.load %arg1[%c0_56, %c2_57, %c0_58, %c1_59] : memref<1x4x16x16xf32, #tpu.memory_space<vmem>>, vector<1x1x16x15xf32>
    %113 = vector.shape_cast %112 : vector<1x1x16x15xf32> to vector<1x16x15xf32>
    %c41 = arith.constant 41 : index
    %114 = memref.load %arg2[%c41] : memref<72xf32, #tpu.memory_space<smem>>
    %115 = vector.broadcast %114 : f32 to vector<1x16x15xf32>
    %116 = arith.mulf %111, %115 : vector<1x16x15xf32>
    %117 = arith.addf %101, %116 : vector<1x16x15xf32>
    %c39 = arith.constant 39 : index
    %118 = memref.load %arg2[%c39] : memref<72xf32, #tpu.memory_space<smem>>
    %119 = vector.broadcast %118 : f32 to vector<1x16x15xf32>
    %120 = arith.mulf %113, %119 : vector<1x16x15xf32>
    %121 = arith.addf %117, %120 : vector<1x16x15xf32>
    %c50 = arith.constant 50 : index
    %122 = memref.load %arg2[%c50] : memref<72xf32, #tpu.memory_space<smem>>
    %123 = vector.broadcast %122 : f32 to vector<1x16x15xf32>
    %124 = arith.mulf %111, %123 : vector<1x16x15xf32>
    %125 = arith.addf %109, %124 : vector<1x16x15xf32>
    %c48 = arith.constant 48 : index
    %126 = memref.load %arg2[%c48] : memref<72xf32, #tpu.memory_space<smem>>
    %127 = vector.broadcast %126 : f32 to vector<1x16x15xf32>
    %128 = arith.mulf %113, %127 : vector<1x16x15xf32>
    %129 = arith.addf %125, %128 : vector<1x16x15xf32>
    %c0_60 = arith.constant 0 : index
    %c3_61 = arith.constant 3 : index
    %c0_62 = arith.constant 0 : index
    %c0_63 = arith.constant 0 : index
    %130 = vector.load %arg1[%c0_60, %c3_61, %c0_62, %c0_63] : memref<1x4x16x16xf32, #tpu.memory_space<vmem>>, vector<1x1x16x15xf32>
    %131 = vector.shape_cast %130 : vector<1x1x16x15xf32> to vector<1x16x15xf32>
    %c0_64 = arith.constant 0 : index
    %c3_65 = arith.constant 3 : index
    %c0_66 = arith.constant 0 : index
    %c1_67 = arith.constant 1 : index
    %132 = vector.load %arg1[%c0_64, %c3_65, %c0_66, %c1_67] : memref<1x4x16x16xf32, #tpu.memory_space<vmem>>, vector<1x1x16x15xf32>
    %133 = vector.shape_cast %132 : vector<1x1x16x15xf32> to vector<1x16x15xf32>
    %c59 = arith.constant 59 : index
    %134 = memref.load %arg2[%c59] : memref<72xf32, #tpu.memory_space<smem>>
    %135 = vector.broadcast %134 : f32 to vector<1x16x15xf32>
    %136 = arith.mulf %131, %135 : vector<1x16x15xf32>
    %137 = arith.addf %121, %136 : vector<1x16x15xf32>
    %c57 = arith.constant 57 : index
    %138 = memref.load %arg2[%c57] : memref<72xf32, #tpu.memory_space<smem>>
    %139 = vector.broadcast %138 : f32 to vector<1x16x15xf32>
    %140 = arith.mulf %133, %139 : vector<1x16x15xf32>
    %141 = arith.addf %137, %140 : vector<1x16x15xf32>
    %c68 = arith.constant 68 : index
    %142 = memref.load %arg2[%c68] : memref<72xf32, #tpu.memory_space<smem>>
    %143 = vector.broadcast %142 : f32 to vector<1x16x15xf32>
    %144 = arith.mulf %131, %143 : vector<1x16x15xf32>
    %145 = arith.addf %129, %144 : vector<1x16x15xf32>
    %c66 = arith.constant 66 : index
    %146 = memref.load %arg2[%c66] : memref<72xf32, #tpu.memory_space<smem>>
    %147 = vector.broadcast %146 : f32 to vector<1x16x15xf32>
    %148 = arith.mulf %133, %147 : vector<1x16x15xf32>
    %149 = arith.addf %145, %148 : vector<1x16x15xf32>
    %cst_68 = arith.constant 3.000000e+00 : f32
    %150 = vector.broadcast %cst_68 : f32 to vector<1x16x15xf32>
    %151 = arith.addf %141, %150 : vector<1x16x15xf32>
    %cst_69 = arith.constant 0.000000e+00 : f32
    %cst_70 = arith.constant 6.000000e+00 : f32
    %152 = vector.broadcast %cst_69 : f32 to vector<1x16x15xf32>
    %153 = arith.maximumf %152, %151 : vector<1x16x15xf32>
    %154 = vector.broadcast %cst_70 : f32 to vector<1x16x15xf32>
    %155 = arith.minimumf %154, %153 : vector<1x16x15xf32>
    %cst_71 = arith.constant 0.166666672 : f32
    %156 = vector.broadcast %cst_71 : f32 to vector<1x16x15xf32>
    %157 = arith.mulf %155, %156 : vector<1x16x15xf32>
    %c0_72 = arith.constant 0 : index
    %c0_73 = arith.constant 0 : index
    %c0_74 = arith.constant 0 : index
    %c1_75 = arith.constant 1 : index
    %c0_76 = arith.constant 0 : index
    %c0_77 = arith.constant 0 : index
    %158 = vector.load %arg4[%c0_72, %c0_73, %c0_74, %c1_75, %c0_76, %c0_77] : memref<1x2x2x2x16x16xf32, #tpu.memory_space<vmem>>, vector<1x1x1x1x16x15xf32>
    %159 = vector.shape_cast %158 : vector<1x1x1x1x16x15xf32> to vector<1x16x15xf32>
    %160 = vector.shape_cast %157 : vector<1x16x15xf32> to vector<1x1x1x1x16x15xf32>
    tpu.vector_store %arg4[%c0_72, %c0_73, %c0_74, %c1_75, %c0_76, %c0_77], %160 {strides = array<i32>} : memref<1x2x2x2x16x16xf32, #tpu.memory_space<vmem>>, vector<1x1x1x1x16x15xf32>,
    %cst_78 = arith.constant 3.000000e+00 : f32
    %161 = vector.broadcast %cst_78 : f32 to vector<1x16x15xf32>
    %162 = arith.addf %149, %161 : vector<1x16x15xf32>
    %cst_79 = arith.constant 0.000000e+00 : f32
    %cst_80 = arith.constant 6.000000e+00 : f32
    %163 = vector.broadcast %cst_79 : f32 to vector<1x16x15xf32>
    %164 = arith.maximumf %163, %162 : vector<1x16x15xf32>
    %165 = vector.broadcast %cst_80 : f32 to vector<1x16x15xf32>
    %166 = arith.minimumf %165, %164 : vector<1x16x15xf32>
    %cst_81 = arith.constant 0.166666672 : f32
    %167 = vector.broadcast %cst_81 : f32 to vector<1x16x15xf32>
    %168 = arith.mulf %166, %167 : vector<1x16x15xf32>
    %c0_82 = arith.constant 0 : index
    %c1_83 = arith.constant 1 : index
    %c0_84 = arith.constant 0 : index
    %c1_85 = arith.constant 1 : index
    %c0_86 = arith.constant 0 : index
    %c0_87 = arith.constant 0 : index
    %169 = vector.load %arg4[%c0_82, %c1_83, %c0_84, %c1_85, %c0_86, %c0_87] : memref<1x2x2x2x16x16xf32, #tpu.memory_space<vmem>>, vector<1x1x1x1x16x15xf32>
    %170 = vector.shape_cast %169 : vector<1x1x1x1x16x15xf32> to vector<1x16x15xf32>
    %171 = vector.shape_cast %168 : vector<1x16x15xf32> to vector<1x1x1x1x16x15xf32>
    tpu.vector_store %arg4[%c0_82, %c1_83, %c0_84, %c1_85, %c0_86, %c0_87], %171 {strides = array<i32>} : memref<1x2x2x2x16x16xf32, #tpu.memory_space<vmem>>, vector<1x1x1x1x16x15xf32>,
    %c0_88 = arith.constant 0 : index
    %172 = memref.load %arg3[%c0_88] : memref<2xf32, #tpu.memory_space<smem>>
    %173 = vector.broadcast %172 : f32 to vector<1x15x16xf32>
    %c1_89 = arith.constant 1 : index
    %174 = memref.load %arg3[%c1_89] : memref<2xf32, #tpu.memory_space<smem>>
    %175 = vector.broadcast %174 : f32 to vector<1x15x16xf32>
    %c0_90 = arith.constant 0 : index
    %c0_91 = arith.constant 0 : index
    %c0_92 = arith.constant 0 : index
    %c0_93 = arith.constant 0 : index
    %176 = vector.load %arg1[%c0_90, %c0_91, %c0_92, %c0_93] : memref<1x4x16x16xf32, #tpu.memory_space<vmem>>, vector<1x1x15x16xf32>
    %177 = vector.shape_cast %176 : vector<1x1x15x16xf32> to vector<1x15x16xf32>
    %c0_94 = arith.constant 0 : index
    %c0_95 = arith.constant 0 : index
    %c1_96 = arith.constant 1 : index
    %c0_97 = arith.constant 0 : index
    %178 = vector.load %arg1[%c0_94, %c0_95, %c1_96, %c0_97] : memref<1x4x16x16xf32, #tpu.memory_space<vmem>>, vector<1x1x15x16xf32>
    %179 = vector.shape_cast %178 : vector<1x1x15x16xf32> to vector<1x15x16xf32>
    %c7 = arith.constant 7 : index
    %180 = memref.load %arg2[%c7] : memref<72xf32, #tpu.memory_space<smem>>
    %181 = vector.broadcast %180 : f32 to vector<1x15x16xf32>
    %182 = arith.mulf %177, %181 : vector<1x15x16xf32>
    %183 = arith.addf %173, %182 : vector<1x15x16xf32>
    %c1_98 = arith.constant 1 : index
    %184 = memref.load %arg2[%c1_98] : memref<72xf32, #tpu.memory_space<smem>>
    %185 = vector.broadcast %184 : f32 to vector<1x15x16xf32>
    %186 = arith.mulf %179, %185 : vector<1x15x16xf32>
    %187 = arith.addf %183, %186 : vector<1x15x16xf32>
    %c16 = arith.constant 16 : index
    %188 = memref.load %arg2[%c16] : memref<72xf32, #tpu.memory_space<smem>>
    %189 = vector.broadcast %188 : f32 to vector<1x15x16xf32>
    %190 = arith.mulf %177, %189 : vector<1x15x16xf32>
    %191 = arith.addf %175, %190 : vector<1x15x16xf32>
    %c10 = arith.constant 10 : index
    %192 = memref.load %arg2[%c10] : memref<72xf32, #tpu.memory_space<smem>>
    %193 = vector.broadcast %192 : f32 to vector<1x15x16xf32>
    %194 = arith.mulf %179, %193 : vector<1x15x16xf32>
    %195 = arith.addf %191, %194 : vector<1x15x16xf32>
    %c0_99 = arith.constant 0 : index
    %c1_100 = arith.constant 1 : index
    %c0_101 = arith.constant 0 : index
    %c0_102 = arith.constant 0 : index
    %196 = vector.load %arg1[%c0_99, %c1_100, %c0_101, %c0_102] : memref<1x4x16x16xf32, #tpu.memory_space<vmem>>, vector<1x1x15x16xf32>
    %197 = vector.shape_cast %196 : vector<1x1x15x16xf32> to vector<1x15x16xf32>
    %c0_103 = arith.constant 0 : index
    %c1_104 = arith.constant 1 : index
    %c1_105 = arith.constant 1 : index
    %c0_106 = arith.constant 0 : index
    %198 = vector.load %arg1[%c0_103, %c1_104, %c1_105, %c0_106] : memref<1x4x16x16xf32, #tpu.memory_space<vmem>>, vector<1x1x15x16xf32>
    %199 = vector.shape_cast %198 : vector<1x1x15x16xf32> to vector<1x15x16xf32>
    %c25 = arith.constant 25 : index
    %200 = memref.load %arg2[%c25] : memref<72xf32, #tpu.memory_space<smem>>
    %201 = vector.broadcast %200 : f32 to vector<1x15x16xf32>
    %202 = arith.mulf %197, %201 : vector<1x15x16xf32>
    %203 = arith.addf %187, %202 : vector<1x15x16xf32>
    %c19 = arith.constant 19 : index
    %204 = memref.load %arg2[%c19] : memref<72xf32, #tpu.memory_space<smem>>
    %205 = vector.broadcast %204 : f32 to vector<1x15x16xf32>
    %206 = arith.mulf %199, %205 : vector<1x15x16xf32>
    %207 = arith.addf %203, %206 : vector<1x15x16xf32>
    %c34 = arith.constant 34 : index
    %208 = memref.load %arg2[%c34] : memref<72xf32, #tpu.memory_space<smem>>
    %209 = vector.broadcast %208 : f32 to vector<1x15x16xf32>
    %210 = arith.mulf %197, %209 : vector<1x15x16xf32>
    %211 = arith.addf %195, %210 : vector<1x15x16xf32>
    %c28 = arith.constant 28 : index
    %212 = memref.load %arg2[%c28] : memref<72xf32, #tpu.memory_space<smem>>
    %213 = vector.broadcast %212 : f32 to vector<1x15x16xf32>
    %214 = arith.mulf %199, %213 : vector<1x15x16xf32>
    %215 = arith.addf %211, %214 : vector<1x15x16xf32>
    %c0_107 = arith.constant 0 : index
    %c2_108 = arith.constant 2 : index
    %c0_109 = arith.constant 0 : index
    %c0_110 = arith.constant 0 : index
    %216 = vector.load %arg1[%c0_107, %c2_108, %c0_109, %c0_110] : memref<1x4x16x16xf32, #tpu.memory_space<vmem>>, vector<1x1x15x16xf32>
    %217 = vector.shape_cast %216 : vector<1x1x15x16xf32> to vector<1x15x16xf32>
    %c0_111 = arith.constant 0 : index
    %c2_112 = arith.constant 2 : index
    %c1_113 = arith.constant 1 : index
    %c0_114 = arith.constant 0 : index
    %218 = vector.load %arg1[%c0_111, %c2_112, %c1_113, %c0_114] : memref<1x4x16x16xf32, #tpu.memory_space<vmem>>, vector<1x1x15x16xf32>
    %219 = vector.shape_cast %218 : vector<1x1x15x16xf32> to vector<1x15x16xf32>
    %c43 = arith.constant 43 : index
    %220 = memref.load %arg2[%c43] : memref<72xf32, #tpu.memory_space<smem>>
    %221 = vector.broadcast %220 : f32 to vector<1x15x16xf32>
    %222 = arith.mulf %217, %221 : vector<1x15x16xf32>
    %223 = arith.addf %207, %222 : vector<1x15x16xf32>
    %c37 = arith.constant 37 : index
    %224 = memref.load %arg2[%c37] : memref<72xf32, #tpu.memory_space<smem>>
    %225 = vector.broadcast %224 : f32 to vector<1x15x16xf32>
    %226 = arith.mulf %219, %225 : vector<1x15x16xf32>
    %227 = arith.addf %223, %226 : vector<1x15x16xf32>
    %c52 = arith.constant 52 : index
    %228 = memref.load %arg2[%c52] : memref<72xf32, #tpu.memory_space<smem>>
    %229 = vector.broadcast %228 : f32 to vector<1x15x16xf32>
    %230 = arith.mulf %217, %229 : vector<1x15x16xf32>
    %231 = arith.addf %215, %230 : vector<1x15x16xf32>
    %c46 = arith.constant 46 : index
    %232 = memref.load %arg2[%c46] : memref<72xf32, #tpu.memory_space<smem>>
    %233 = vector.broadcast %232 : f32 to vector<1x15x16xf32>
    %234 = arith.mulf %219, %233 : vector<1x15x16xf32>
    %235 = arith.addf %231, %234 : vector<1x15x16xf32>
    %c0_115 = arith.constant 0 : index
    %c3_116 = arith.constant 3 : index
    %c0_117 = arith.constant 0 : index
    %c0_118 = arith.constant 0 : index
    %236 = vector.load %arg1[%c0_115, %c3_116, %c0_117, %c0_118] : memref<1x4x16x16xf32, #tpu.memory_space<vmem>>, vector<1x1x15x16xf32>
    %237 = vector.shape_cast %236 : vector<1x1x15x16xf32> to vector<1x15x16xf32>
    %c0_119 = arith.constant 0 : index
    %c3_120 = arith.constant 3 : index
    %c1_121 = arith.constant 1 : index
    %c0_122 = arith.constant 0 : index
    %238 = vector.load %arg1[%c0_119, %c3_120, %c1_121, %c0_122] : memref<1x4x16x16xf32, #tpu.memory_space<vmem>>, vector<1x1x15x16xf32>
    %239 = vector.shape_cast %238 : vector<1x1x15x16xf32> to vector<1x15x16xf32>
    %c61 = arith.constant 61 : index
    %240 = memref.load %arg2[%c61] : memref<72xf32, #tpu.memory_space<smem>>
    %241 = vector.broadcast %240 : f32 to vector<1x15x16xf32>
    %242 = arith.mulf %237, %241 : vector<1x15x16xf32>
    %243 = arith.addf %227, %242 : vector<1x15x16xf32>
    %c55 = arith.constant 55 : index
    %244 = memref.load %arg2[%c55] : memref<72xf32, #tpu.memory_space<smem>>
    %245 = vector.broadcast %244 : f32 to vector<1x15x16xf32>
    %246 = arith.mulf %239, %245 : vector<1x15x16xf32>
    %247 = arith.addf %243, %246 : vector<1x15x16xf32>
    %c70 = arith.constant 70 : index
    %248 = memref.load %arg2[%c70] : memref<72xf32, #tpu.memory_space<smem>>
    %249 = vector.broadcast %248 : f32 to vector<1x15x16xf32>
    %250 = arith.mulf %237, %249 : vector<1x15x16xf32>
    %251 = arith.addf %235, %250 : vector<1x15x16xf32>
    %c64 = arith.constant 64 : index
    %252 = memref.load %arg2[%c64] : memref<72xf32, #tpu.memory_space<smem>>
    %253 = vector.broadcast %252 : f32 to vector<1x15x16xf32>
    %254 = arith.mulf %239, %253 : vector<1x15x16xf32>
    %255 = arith.addf %251, %254 : vector<1x15x16xf32>
    %cst_123 = arith.constant 3.000000e+00 : f32
    %256 = vector.broadcast %cst_123 : f32 to vector<1x15x16xf32>
    %257 = arith.addf %247, %256 : vector<1x15x16xf32>
    %cst_124 = arith.constant 0.000000e+00 : f32
    %cst_125 = arith.constant 6.000000e+00 : f32
    %258 = vector.broadcast %cst_124 : f32 to vector<1x15x16xf32>
    %259 = arith.maximumf %258, %257 : vector<1x15x16xf32>
    %260 = vector.broadcast %cst_125 : f32 to vector<1x15x16xf32>
    %261 = arith.minimumf %260, %259 : vector<1x15x16xf32>
    %cst_126 = arith.constant 0.166666672 : f32
    %262 = vector.broadcast %cst_126 : f32 to vector<1x15x16xf32>
    %263 = arith.mulf %261, %262 : vector<1x15x16xf32>
    %c0_127 = arith.constant 0 : index
    %c0_128 = arith.constant 0 : index
    %c1_129 = arith.constant 1 : index
    %c0_130 = arith.constant 0 : index
    %c0_131 = arith.constant 0 : index
    %c0_132 = arith.constant 0 : index
    %264 = vector.load %arg4[%c0_127, %c0_128, %c1_129, %c0_130, %c0_131, %c0_132] : memref<1x2x2x2x16x16xf32, #tpu.memory_space<vmem>>, vector<1x1x1x1x15x16xf32>
    %265 = vector.shape_cast %264 : vector<1x1x1x1x15x16xf32> to vector<1x15x16xf32>
    %266 = vector.shape_cast %263 : vector<1x15x16xf32> to vector<1x1x1x1x15x16xf32>
    tpu.vector_store %arg4[%c0_127, %c0_128, %c1_129, %c0_130, %c0_131, %c0_132], %266 {strides = array<i32>} : memref<1x2x2x2x16x16xf32, #tpu.memory_space<vmem>>, vector<1x1x1x1x15x16xf32>,
    %cst_133 = arith.constant 3.000000e+00 : f32
    %267 = vector.broadcast %cst_133 : f32 to vector<1x15x16xf32>
    %268 = arith.addf %255, %267 : vector<1x15x16xf32>
    %cst_134 = arith.constant 0.000000e+00 : f32
    %cst_135 = arith.constant 6.000000e+00 : f32
    %269 = vector.broadcast %cst_134 : f32 to vector<1x15x16xf32>
    %270 = arith.maximumf %269, %268 : vector<1x15x16xf32>
    %271 = vector.broadcast %cst_135 : f32 to vector<1x15x16xf32>
    %272 = arith.minimumf %271, %270 : vector<1x15x16xf32>
    %cst_136 = arith.constant 0.166666672 : f32
    %273 = vector.broadcast %cst_136 : f32 to vector<1x15x16xf32>
    %274 = arith.mulf %272, %273 : vector<1x15x16xf32>
    %c0_137 = arith.constant 0 : index
    %c1_138 = arith.constant 1 : index
    %c1_139 = arith.constant 1 : index
    %c0_140 = arith.constant 0 : index
    %c0_141 = arith.constant 0 : index
    %c0_142 = arith.constant 0 : index
    %275 = vector.load %arg4[%c0_137, %c1_138, %c1_139, %c0_140, %c0_141, %c0_142] : memref<1x2x2x2x16x16xf32, #tpu.memory_space<vmem>>, vector<1x1x1x1x15x16xf32>
    %276 = vector.shape_cast %275 : vector<1x1x1x1x15x16xf32> to vector<1x15x16xf32>
    %277 = vector.shape_cast %274 : vector<1x15x16xf32> to vector<1x1x1x1x15x16xf32>
    tpu.vector_store %arg4[%c0_137, %c1_138, %c1_139, %c0_140, %c0_141, %c0_142], %277 {strides = array<i32>} : memref<1x2x2x2x16x16xf32, #tpu.memory_space<vmem>>, vector<1x1x1x1x15x16xf32>,
    %c0_143 = arith.constant 0 : index
    %278 = memref.load %arg3[%c0_143] : memref<2xf32, #tpu.memory_space<smem>>
    %279 = vector.broadcast %278 : f32 to vector<1x15x15xf32>
    %c1_144 = arith.constant 1 : index
    %280 = memref.load %arg3[%c1_144] : memref<2xf32, #tpu.memory_space<smem>>
    %281 = vector.broadcast %280 : f32 to vector<1x15x15xf32>
    %c0_145 = arith.constant 0 : index
    %c0_146 = arith.constant 0 : index
    %c0_147 = arith.constant 0 : index
    %c0_148 = arith.constant 0 : index
    %282 = vector.load %arg1[%c0_145, %c0_146, %c0_147, %c0_148] : memref<1x4x16x16xf32, #tpu.memory_space<vmem>>, vector<1x1x15x15xf32>
    %283 = vector.shape_cast %282 : vector<1x1x15x15xf32> to vector<1x15x15xf32>
    %c0_149 = arith.constant 0 : index
    %c0_150 = arith.constant 0 : index
    %c0_151 = arith.constant 0 : index
    %c1_152 = arith.constant 1 : index
    %284 = vector.load %arg1[%c0_149, %c0_150, %c0_151, %c1_152] : memref<1x4x16x16xf32, #tpu.memory_space<vmem>>, vector<1x1x15x15xf32>
    %285 = vector.shape_cast %284 : vector<1x1x15x15xf32> to vector<1x15x15xf32>
    %c0_153 = arith.constant 0 : index
    %c0_154 = arith.constant 0 : index
    %c1_155 = arith.constant 1 : index
    %c0_156 = arith.constant 0 : index
    %286 = vector.load %arg1[%c0_153, %c0_154, %c1_155, %c0_156] : memref<1x4x16x16xf32, #tpu.memory_space<vmem>>, vector<1x1x15x15xf32>
    %287 = vector.shape_cast %286 : vector<1x1x15x15xf32> to vector<1x15x15xf32>
    %c0_157 = arith.constant 0 : index
    %c0_158 = arith.constant 0 : index
    %c1_159 = arith.constant 1 : index
    %c1_160 = arith.constant 1 : index
    %288 = vector.load %arg1[%c0_157, %c0_158, %c1_159, %c1_160] : memref<1x4x16x16xf32, #tpu.memory_space<vmem>>, vector<1x1x15x15xf32>
    %289 = vector.shape_cast %288 : vector<1x1x15x15xf32> to vector<1x15x15xf32>
    %c8 = arith.constant 8 : index
    %290 = memref.load %arg2[%c8] : memref<72xf32, #tpu.memory_space<smem>>
    %291 = vector.broadcast %290 : f32 to vector<1x15x15xf32>
    %292 = arith.mulf %283, %291 : vector<1x15x15xf32>
    %293 = arith.addf %279, %292 : vector<1x15x15xf32>
    %c6 = arith.constant 6 : index
    %294 = memref.load %arg2[%c6] : memref<72xf32, #tpu.memory_space<smem>>
    %295 = vector.broadcast %294 : f32 to vector<1x15x15xf32>
    %296 = arith.mulf %285, %295 : vector<1x15x15xf32>
    %297 = arith.addf %293, %296 : vector<1x15x15xf32>
    %c2_161 = arith.constant 2 : index
    %298 = memref.load %arg2[%c2_161] : memref<72xf32, #tpu.memory_space<smem>>
    %299 = vector.broadcast %298 : f32 to vector<1x15x15xf32>
    %300 = arith.mulf %287, %299 : vector<1x15x15xf32>
    %301 = arith.addf %297, %300 : vector<1x15x15xf32>
    %c0_162 = arith.constant 0 : index
    %302 = memref.load %arg2[%c0_162] : memref<72xf32, #tpu.memory_space<smem>>
    %303 = vector.broadcast %302 : f32 to vector<1x15x15xf32>
    %304 = arith.mulf %289, %303 : vector<1x15x15xf32>
    %305 = arith.addf %301, %304 : vector<1x15x15xf32>
    %c17 = arith.constant 17 : index
    %306 = memref.load %arg2[%c17] : memref<72xf32, #tpu.memory_space<smem>>
    %307 = vector.broadcast %306 : f32 to vector<1x15x15xf32>
    %308 = arith.mulf %283, %307 : vector<1x15x15xf32>
    %309 = arith.addf %281, %308 : vector<1x15x15xf32>
    %c15 = arith.constant 15 : index
    %310 = memref.load %arg2[%c15] : memref<72xf32, #tpu.memory_space<smem>>
    %311 = vector.broadcast %310 : f32 to vector<1x15x15xf32>
    %312 = arith.mulf %285, %311 : vector<1x15x15xf32>
    %313 = arith.addf %309, %312 : vector<1x15x15xf32>
    %c11 = arith.constant 11 : index
    %314 = memref.load %arg2[%c11] : memref<72xf32, #tpu.memory_space<smem>>
    %315 = vector.broadcast %314 : f32 to vector<1x15x15xf32>
    %316 = arith.mulf %287, %315 : vector<1x15x15xf32>
    %317 = arith.addf %313, %316 : vector<1x15x15xf32>
    %c9 = arith.constant 9 : index
    %318 = memref.load %arg2[%c9] : memref<72xf32, #tpu.memory_space<smem>>
    %319 = vector.broadcast %318 : f32 to vector<1x15x15xf32>
    %320 = arith.mulf %289, %319 : vector<1x15x15xf32>
    %321 = arith.addf %317, %320 : vector<1x15x15xf32>
    %c0_163 = arith.constant 0 : index
    %c1_164 = arith.constant 1 : index
    %c0_165 = arith.constant 0 : index
    %c0_166 = arith.constant 0 : index
    %322 = vector.load %arg1[%c0_163, %c1_164, %c0_165, %c0_166] : memref<1x4x16x16xf32, #tpu.memory_space<vmem>>, vector<1x1x15x15xf32>
    %323 = vector.shape_cast %322 : vector<1x1x15x15xf32> to vector<1x15x15xf32>
    %c0_167 = arith.constant 0 : index
    %c1_168 = arith.constant 1 : index
    %c0_169 = arith.constant 0 : index
    %c1_170 = arith.constant 1 : index
    %324 = vector.load %arg1[%c0_167, %c1_168, %c0_169, %c1_170] : memref<1x4x16x16xf32, #tpu.memory_space<vmem>>, vector<1x1x15x15xf32>
    %325 = vector.shape_cast %324 : vector<1x1x15x15xf32> to vector<1x15x15xf32>
    %c0_171 = arith.constant 0 : index
    %c1_172 = arith.constant 1 : index
    %c1_173 = arith.constant 1 : index
    %c0_174 = arith.constant 0 : index
    %326 = vector.load %arg1[%c0_171, %c1_172, %c1_173, %c0_174] : memref<1x4x16x16xf32, #tpu.memory_space<vmem>>, vector<1x1x15x15xf32>
    %327 = vector.shape_cast %326 : vector<1x1x15x15xf32> to vector<1x15x15xf32>
    %c0_175 = arith.constant 0 : index
    %c1_176 = arith.constant 1 : index
    %c1_177 = arith.constant 1 : index
    %c1_178 = arith.constant 1 : index
    %328 = vector.load %arg1[%c0_175, %c1_176, %c1_177, %c1_178] : memref<1x4x16x16xf32, #tpu.memory_space<vmem>>, vector<1x1x15x15xf32>
    %329 = vector.shape_cast %328 : vector<1x1x15x15xf32> to vector<1x15x15xf32>
    %c26 = arith.constant 26 : index
    %330 = memref.load %arg2[%c26] : memref<72xf32, #tpu.memory_space<smem>>
    %331 = vector.broadcast %330 : f32 to vector<1x15x15xf32>
    %332 = arith.mulf %323, %331 : vector<1x15x15xf32>
    %333 = arith.addf %305, %332 : vector<1x15x15xf32>
    %c24 = arith.constant 24 : index
    %334 = memref.load %arg2[%c24] : memref<72xf32, #tpu.memory_space<smem>>
    %335 = vector.broadcast %334 : f32 to vector<1x15x15xf32>
    %336 = arith.mulf %325, %335 : vector<1x15x15xf32>
    %337 = arith.addf %333, %336 : vector<1x15x15xf32>
    %c20 = arith.constant 20 : index
    %338 = memref.load %arg2[%c20] : memref<72xf32, #tpu.memory_space<smem>>
    %339 = vector.broadcast %338 : f32 to vector<1x15x15xf32>
    %340 = arith.mulf %327, %339 : vector<1x15x15xf32>
    %341 = arith.addf %337, %340 : vector<1x15x15xf32>
    %c18 = arith.constant 18 : index
    %342 = memref.load %arg2[%c18] : memref<72xf32, #tpu.memory_space<smem>>
    %343 = vector.broadcast %342 : f32 to vector<1x15x15xf32>
    %344 = arith.mulf %329, %343 : vector<1x15x15xf32>
    %345 = arith.addf %341, %344 : vector<1x15x15xf32>
    %c35 = arith.constant 35 : index
    %346 = memref.load %arg2[%c35] : memref<72xf32, #tpu.memory_space<smem>>
    %347 = vector.broadcast %346 : f32 to vector<1x15x15xf32>
    %348 = arith.mulf %323, %347 : vector<1x15x15xf32>
    %349 = arith.addf %321, %348 : vector<1x15x15xf32>
    %c33 = arith.constant 33 : index
    %350 = memref.load %arg2[%c33] : memref<72xf32, #tpu.memory_space<smem>>
    %351 = vector.broadcast %350 : f32 to vector<1x15x15xf32>
    %352 = arith.mulf %325, %351 : vector<1x15x15xf32>
    %353 = arith.addf %349, %352 : vector<1x15x15xf32>
    %c29 = arith.constant 29 : index
    %354 = memref.load %arg2[%c29] : memref<72xf32, #tpu.memory_space<smem>>
    %355 = vector.broadcast %354 : f32 to vector<1x15x15xf32>
    %356 = arith.mulf %327, %355 : vector<1x15x15xf32>
    %357 = arith.addf %353, %356 : vector<1x15x15xf32>
    %c27 = arith.constant 27 : index
    %358 = memref.load %arg2[%c27] : memref<72xf32, #tpu.memory_space<smem>>
    %359 = vector.broadcast %358 : f32 to vector<1x15x15xf32>
    %360 = arith.mulf %329, %359 : vector<1x15x15xf32>
    %361 = arith.addf %357, %360 : vector<1x15x15xf32>
    %c0_179 = arith.constant 0 : index
    %c2_180 = arith.constant 2 : index
    %c0_181 = arith.constant 0 : index
    %c0_182 = arith.constant 0 : index
    %362 = vector.load %arg1[%c0_179, %c2_180, %c0_181, %c0_182] : memref<1x4x16x16xf32, #tpu.memory_space<vmem>>, vector<1x1x15x15xf32>
    %363 = vector.shape_cast %362 : vector<1x1x15x15xf32> to vector<1x15x15xf32>
    %c0_183 = arith.constant 0 : index
    %c2_184 = arith.constant 2 : index
    %c0_185 = arith.constant 0 : index
    %c1_186 = arith.constant 1 : index
    %364 = vector.load %arg1[%c0_183, %c2_184, %c0_185, %c1_186] : memref<1x4x16x16xf32, #tpu.memory_space<vmem>>, vector<1x1x15x15xf32>
    %365 = vector.shape_cast %364 : vector<1x1x15x15xf32> to vector<1x15x15xf32>
    %c0_187 = arith.constant 0 : index
    %c2_188 = arith.constant 2 : index
    %c1_189 = arith.constant 1 : index
    %c0_190 = arith.constant 0 : index
    %366 = vector.load %arg1[%c0_187, %c2_188, %c1_189, %c0_190] : memref<1x4x16x16xf32, #tpu.memory_space<vmem>>, vector<1x1x15x15xf32>
    %367 = vector.shape_cast %366 : vector<1x1x15x15xf32> to vector<1x15x15xf32>
    %c0_191 = arith.constant 0 : index
    %c2_192 = arith.constant 2 : index
    %c1_193 = arith.constant 1 : index
    %c1_194 = arith.constant 1 : index
    %368 = vector.load %arg1[%c0_191, %c2_192, %c1_193, %c1_194] : memref<1x4x16x16xf32, #tpu.memory_space<vmem>>, vector<1x1x15x15xf32>
    %369 = vector.shape_cast %368 : vector<1x1x15x15xf32> to vector<1x15x15xf32>
    %c44 = arith.constant 44 : index
    %370 = memref.load %arg2[%c44] : memref<72xf32, #tpu.memory_space<smem>>
    %371 = vector.broadcast %370 : f32 to vector<1x15x15xf32>
    %372 = arith.mulf %363, %371 : vector<1x15x15xf32>
    %373 = arith.addf %345, %372 : vector<1x15x15xf32>
    %c42 = arith.constant 42 : index
    %374 = memref.load %arg2[%c42] : memref<72xf32, #tpu.memory_space<smem>>
    %375 = vector.broadcast %374 : f32 to vector<1x15x15xf32>
    %376 = arith.mulf %365, %375 : vector<1x15x15xf32>
    %377 = arith.addf %373, %376 : vector<1x15x15xf32>
    %c38 = arith.constant 38 : index
    %378 = memref.load %arg2[%c38] : memref<72xf32, #tpu.memory_space<smem>>
    %379 = vector.broadcast %378 : f32 to vector<1x15x15xf32>
    %380 = arith.mulf %367, %379 : vector<1x15x15xf32>
    %381 = arith.addf %377, %380 : vector<1x15x15xf32>
    %c36 = arith.constant 36 : index
    %382 = memref.load %arg2[%c36] : memref<72xf32, #tpu.memory_space<smem>>
    %383 = vector.broadcast %382 : f32 to vector<1x15x15xf32>
    %384 = arith.mulf %369, %383 : vector<1x15x15xf32>
    %385 = arith.addf %381, %384 : vector<1x15x15xf32>
    %c53 = arith.constant 53 : index
    %386 = memref.load %arg2[%c53] : memref<72xf32, #tpu.memory_space<smem>>
    %387 = vector.broadcast %386 : f32 to vector<1x15x15xf32>
    %388 = arith.mulf %363, %387 : vector<1x15x15xf32>
    %389 = arith.addf %361, %388 : vector<1x15x15xf32>
    %c51 = arith.constant 51 : index
    %390 = memref.load %arg2[%c51] : memref<72xf32, #tpu.memory_space<smem>>
    %391 = vector.broadcast %390 : f32 to vector<1x15x15xf32>
    %392 = arith.mulf %365, %391 : vector<1x15x15xf32>
    %393 = arith.addf %389, %392 : vector<1x15x15xf32>
    %c47 = arith.constant 47 : index
    %394 = memref.load %arg2[%c47] : memref<72xf32, #tpu.memory_space<smem>>
    %395 = vector.broadcast %394 : f32 to vector<1x15x15xf32>
    %396 = arith.mulf %367, %395 : vector<1x15x15xf32>
    %397 = arith.addf %393, %396 : vector<1x15x15xf32>
    %c45 = arith.constant 45 : index
    %398 = memref.load %arg2[%c45] : memref<72xf32, #tpu.memory_space<smem>>
    %399 = vector.broadcast %398 : f32 to vector<1x15x15xf32>
    %400 = arith.mulf %369, %399 : vector<1x15x15xf32>
    %401 = arith.addf %397, %400 : vector<1x15x15xf32>
    %c0_195 = arith.constant 0 : index
    %c3_196 = arith.constant 3 : index
    %c0_197 = arith.constant 0 : index
    %c0_198 = arith.constant 0 : index
    %402 = vector.load %arg1[%c0_195, %c3_196, %c0_197, %c0_198] : memref<1x4x16x16xf32, #tpu.memory_space<vmem>>, vector<1x1x15x15xf32>
    %403 = vector.shape_cast %402 : vector<1x1x15x15xf32> to vector<1x15x15xf32>
    %c0_199 = arith.constant 0 : index
    %c3_200 = arith.constant 3 : index
    %c0_201 = arith.constant 0 : index
    %c1_202 = arith.constant 1 : index
    %404 = vector.load %arg1[%c0_199, %c3_200, %c0_201, %c1_202] : memref<1x4x16x16xf32, #tpu.memory_space<vmem>>, vector<1x1x15x15xf32>
    %405 = vector.shape_cast %404 : vector<1x1x15x15xf32> to vector<1x15x15xf32>
    %c0_203 = arith.constant 0 : index
    %c3_204 = arith.constant 3 : index
    %c1_205 = arith.constant 1 : index
    %c0_206 = arith.constant 0 : index
    %406 = vector.load %arg1[%c0_203, %c3_204, %c1_205, %c0_206] : memref<1x4x16x16xf32, #tpu.memory_space<vmem>>, vector<1x1x15x15xf32>
    %407 = vector.shape_cast %406 : vector<1x1x15x15xf32> to vector<1x15x15xf32>
    %c0_207 = arith.constant 0 : index
    %c3_208 = arith.constant 3 : index
    %c1_209 = arith.constant 1 : index
    %c1_210 = arith.constant 1 : index
    %408 = vector.load %arg1[%c0_207, %c3_208, %c1_209, %c1_210] : memref<1x4x16x16xf32, #tpu.memory_space<vmem>>, vector<1x1x15x15xf32>
    %409 = vector.shape_cast %408 : vector<1x1x15x15xf32> to vector<1x15x15xf32>
    %c62 = arith.constant 62 : index
    %410 = memref.load %arg2[%c62] : memref<72xf32, #tpu.memory_space<smem>>
    %411 = vector.broadcast %410 : f32 to vector<1x15x15xf32>
    %412 = arith.mulf %403, %411 : vector<1x15x15xf32>
    %413 = arith.addf %385, %412 : vector<1x15x15xf32>
    %c60 = arith.constant 60 : index
    %414 = memref.load %arg2[%c60] : memref<72xf32, #tpu.memory_space<smem>>
    %415 = vector.broadcast %414 : f32 to vector<1x15x15xf32>
    %416 = arith.mulf %405, %415 : vector<1x15x15xf32>
    %417 = arith.addf %413, %416 : vector<1x15x15xf32>
    %c56 = arith.constant 56 : index
    %418 = memref.load %arg2[%c56] : memref<72xf32, #tpu.memory_space<smem>>
    %419 = vector.broadcast %418 : f32 to vector<1x15x15xf32>
    %420 = arith.mulf %407, %419 : vector<1x15x15xf32>
    %421 = arith.addf %417, %420 : vector<1x15x15xf32>
    %c54 = arith.constant 54 : index
    %422 = memref.load %arg2[%c54] : memref<72xf32, #tpu.memory_space<smem>>
    %423 = vector.broadcast %422 : f32 to vector<1x15x15xf32>
    %424 = arith.mulf %409, %423 : vector<1x15x15xf32>
    %425 = arith.addf %421, %424 : vector<1x15x15xf32>
    %c71 = arith.constant 71 : index
    %426 = memref.load %arg2[%c71] : memref<72xf32, #tpu.memory_space<smem>>
    %427 = vector.broadcast %426 : f32 to vector<1x15x15xf32>
    %428 = arith.mulf %403, %427 : vector<1x15x15xf32>
    %429 = arith.addf %401, %428 : vector<1x15x15xf32>
    %c69 = arith.constant 69 : index
    %430 = memref.load %arg2[%c69] : memref<72xf32, #tpu.memory_space<smem>>
    %431 = vector.broadcast %430 : f32 to vector<1x15x15xf32>
    %432 = arith.mulf %405, %431 : vector<1x15x15xf32>
    %433 = arith.addf %429, %432 : vector<1x15x15xf32>
    %c65 = arith.constant 65 : index
    %434 = memref.load %arg2[%c65] : memref<72xf32, #tpu.memory_space<smem>>
    %435 = vector.broadcast %434 : f32 to vector<1x15x15xf32>
    %436 = arith.mulf %407, %435 : vector<1x15x15xf32>
    %437 = arith.addf %433, %436 : vector<1x15x15xf32>
    %c63 = arith.constant 63 : index
    %438 = memref.load %arg2[%c63] : memref<72xf32, #tpu.memory_space<smem>>
    %439 = vector.broadcast %438 : f32 to vector<1x15x15xf32>
    %440 = arith.mulf %409, %439 : vector<1x15x15xf32>
    %441 = arith.addf %437, %440 : vector<1x15x15xf32>
    %cst_211 = arith.constant 3.000000e+00 : f32
    %442 = vector.broadcast %cst_211 : f32 to vector<1x15x15xf32>
    %443 = arith.addf %425, %442 : vector<1x15x15xf32>
    %cst_212 = arith.constant 0.000000e+00 : f32
    %cst_213 = arith.constant 6.000000e+00 : f32
    %444 = vector.broadcast %cst_212 : f32 to vector<1x15x15xf32>
    %445 = arith.maximumf %444, %443 : vector<1x15x15xf32>
    %446 = vector.broadcast %cst_213 : f32 to vector<1x15x15xf32>
    %447 = arith.minimumf %446, %445 : vector<1x15x15xf32>
    %cst_214 = arith.constant 0.166666672 : f32
    %448 = vector.broadcast %cst_214 : f32 to vector<1x15x15xf32>
    %449 = arith.mulf %447, %448 : vector<1x15x15xf32>
    %c0_215 = arith.constant 0 : index
    %c0_216 = arith.constant 0 : index
    %c1_217 = arith.constant 1 : index
    %c1_218 = arith.constant 1 : index
    %c0_219 = arith.constant 0 : index
    %c0_220 = arith.constant 0 : index
    %450 = vector.load %arg4[%c0_215, %c0_216, %c1_217, %c1_218, %c0_219, %c0_220] : memref<1x2x2x2x16x16xf32, #tpu.memory_space<vmem>>, vector<1x1x1x1x15x15xf32>
    %451 = vector.shape_cast %450 : vector<1x1x1x1x15x15xf32> to vector<1x15x15xf32>
    %452 = vector.shape_cast %449 : vector<1x15x15xf32> to vector<1x1x1x1x15x15xf32>
    tpu.vector_store %arg4[%c0_215, %c0_216, %c1_217, %c1_218, %c0_219, %c0_220], %452 {strides = array<i32>} : memref<1x2x2x2x16x16xf32, #tpu.memory_space<vmem>>, vector<1x1x1x1x15x15xf32>,
    %cst_221 = arith.constant 3.000000e+00 : f32
    %453 = vector.broadcast %cst_221 : f32 to vector<1x15x15xf32>
    %454 = arith.addf %441, %453 : vector<1x15x15xf32>
    %cst_222 = arith.constant 0.000000e+00 : f32
    %cst_223 = arith.constant 6.000000e+00 : f32
    %455 = vector.broadcast %cst_222 : f32 to vector<1x15x15xf32>
    %456 = arith.maximumf %455, %454 : vector<1x15x15xf32>
    %457 = vector.broadcast %cst_223 : f32 to vector<1x15x15xf32>
    %458 = arith.minimumf %457, %456 : vector<1x15x15xf32>
    %cst_224 = arith.constant 0.166666672 : f32
    %459 = vector.broadcast %cst_224 : f32 to vector<1x15x15xf32>
    %460 = arith.mulf %458, %459 : vector<1x15x15xf32>
    %c0_225 = arith.constant 0 : index
    %c1_226 = arith.constant 1 : index
    %c1_227 = arith.constant 1 : index
    %c1_228 = arith.constant 1 : index
    %c0_229 = arith.constant 0 : index
    %c0_230 = arith.constant 0 : index
    %461 = vector.load %arg4[%c0_225, %c1_226, %c1_227, %c1_228, %c0_229, %c0_230] : memref<1x2x2x2x16x16xf32, #tpu.memory_space<vmem>>, vector<1x1x1x1x15x15xf32>
    %462 = vector.shape_cast %461 : vector<1x1x1x1x15x15xf32> to vector<1x15x15xf32>
    %463 = vector.shape_cast %460 : vector<1x15x15xf32> to vector<1x1x1x1x15x15xf32>
    tpu.vector_store %arg4[%c0_225, %c1_226, %c1_227, %c1_228, %c0_229, %c0_230], %463 {strides = array<i32>} : memref<1x2x2x2x16x16xf32, #tpu.memory_space<vmem>>, vector<1x1x1x1x15x15xf32>,
    return
  }
  func.func @transform_0(%arg0: i32) -> (i32, i32, i32, i32) {
    %c0_i32 = arith.constant 0 : i32
    %c0_i32_0 = arith.constant 0 : i32
    %c0_i32_1 = arith.constant 0 : i32
    %c0_i32_2 = arith.constant 0 : i32
    return %arg0, %c0_i32, %c0_i32_0, %c0_i32_1 : i32, i32, i32, i32
  }
  func.func @transform_1(%arg0: i32) -> i32 {
    %c0_i32 = arith.constant 0 : i32
    %c0_i32_0 = arith.constant 0 : i32
    return %c0_i32 : i32
  }
  func.func @transform_2(%arg0: i32) -> i32 {
    %c0_i32 = arith.constant 0 : i32
    %c0_i32_0 = arith.constant 0 : i32
    return %c0_i32 : i32
  }
  func.func @transform_3(%arg0: i32) -> (i32, i32, i32, i32, i32, i32) {
    %c0_i32 = arith.constant 0 : i32
    %c0_i32_0 = arith.constant 0 : i32
    %c0_i32_1 = arith.constant 0 : i32
    %c0_i32_2 = arith.constant 0 : i32
    %c0_i32_3 = arith.constant 0 : i32
    %c0_i32_4 = arith.constant 0 : i32
    return %arg0, %c0_i32, %c0_i32_0, %c0_i32_1, %c0_i32_2, %c0_i32_3 : i32, i32, i32, i32, i32, i32
  }
}

</mosaic_0001>

<bundles_post_ra>
// kernel: model_forward.1
= control target key start
LH: loop header
LB: loop body
LE: loop exit
PB: predicated region body
PF: predicated region fallthrough
CT: control target
= control target key end

     0   :  { %8 = vsyncpa [#allocation3], 0  ;;  %s2211_s0 = inlined_call_operand.hbm [shape: f32[2,4,16,16], index: 0, kind: input, shape index: {}]   ;;  %s2212_s1 = inlined_call_operand.vmem [shape: f32[72], index: 1, kind: input, shape index: {}]   ;;  %s2213_s2 = inlined_call_operand.vmem [shape: f32[2], index: 2, kind: input, shape index: {}]   ;;  %s2214_s3 = inlined_call_operand.vmem [shape: f32[2,2,2,2,16,16], index: 3, kind: output, shape index: {}]  }
   0x1   :  { %10 = vsyncpa [#allocation3 + $0x1], 0 }
   0x2   :  { %11 = vsyncpa [#allocation4], 0 }
   0x3   :  { %12 = vsyncpa [#allocation7], 0  ;;  %s1425_s12 = smov 0   ;;  %s1427_s13 = smov 0  }
   0x4   :  { %s1429_s14 = smov 0   ;;  %s1431_s15 = smov 0  }
   0x5 LB: > { %s1444_s16 = sadd.s32 4294967295, %s1397_s15   ;;  %s1447_s17 = sadd.s32 1, %s1397_s15   ;;  %s1397_s15 = sphi %s1431_s15, %s2234_s15   ;;  %s1393_s14 = sphi %s1429_s14, %s2233_s14   ;;  %s1389_s13 = sphi %s1427_s13, %s2232_s13   ;;  %s1385_s12 = sphi %s1425_s12, %s2231_s12  }
   0x6   : > { %s22_s18 = ssub.s32 %s1397_s15, %s1447_s17  ;;  %s25_s19 = sadd.s32 1, %s1393_s14 }
   0x7   : > { %p23_p0 = scmp.eq.s32.totalorder %s22_s18, 0  ;;  %p32_p1 = scmp.ne.s32.totalorder %s1393_s14, %s1389_s13 }
   0x8   : > { %p33_p2 = scmp.eq.s32.totalorder %s1397_s15, 0  ;;  %p38_p3 = scmp.ne.s32.totalorder %s1389_s13, %s1385_s12 }
   0x9   : > { %s1457_s20 = scalar_select %p23_p0, %s1393_s14, %s25_s19  }
   0xa   : > { %p1459_p4 = por %p33_p2, %p32_p1  ;;  %p2215_p5 = scmp.eq.s32.totalorder %s1444_s16, 0 }
   0xb   : > { %p1090_p6 = scmp.ge.s32.totalorder %s1397_s15, 1  ;;  %p117_p7 = scmp.lt.s32.totalorder %s1397_s15, 3 }
   0xc   : > { %p1468_p8 = por %p2215_p5, %p38_p3  ;;  %s130_s26 = sshll.u32 %s2212_s1, 4  ;;  %s131_s26 = int_to_ptr.vmem [resolvable:$true] %s130_s26 }
   0xd   : > { %p1472_p9 = pnand %p1090_p6, %p117_p7  ;;  %p1255_p11 = scmp.lt.s32.totalorder %s1397_s15, 2 }
   0xe   : > { %s2220_s22 = scalar_select %p1468_p8, 1, 0 }
   0xf   : > { %s2221_s23 = scalar_select %p1472_p9, 1, 0 }
  0x10   : > { %p1242_p10 = pneg %p1472_p9  ;;  %s141_s29 = sshll.u32 %s2213_s2, 4  ;;  %s142_s29 = int_to_ptr.vmem [resolvable:$true] %s141_s29 }
  0x11   : > { %p1493_p13 = pnand %p1255_p11, %p1459_p4  ;;  %s152_s5 = sand.u32 1, %s1393_s14  }
  0x12   : > { %p1487_p12 = pnand %p1242_p10, %p2215_p5  ;;  %s1295_s6 = scalar_lea.vmem %s131_s26, 16 }
  0x13   : > { %s2223_s4 = scalar_select %p1493_p13, 1, 0 }
  0x14   : > { %p1296_p0 = scmp.ne.s32.totalorder %s131_s26, %s1295_s6  ;;  %p1297_p1 = pneg %p1487_p12 }
  0x15   : > { %p1303_p6 = scmp.lt.s32.totalorder %s131_s26, %s131_s26  ;;  %p1304_p7 = scmp.lt.s32.totalorder %s1295_s6, %s1295_s6 }
  0x16   : > { %p1298_p2 = pnand %p1297_p1, %p1296_p0 }
  0x17   : > { %p1305_p10 = por %p1304_p7, %p1303_p6 }
  0x18   : > { %p1299_p3 = pneg %p1298_p2 }
  0x1a   : > { %p1306_p5 = pnand %p1305_p10, %p1299_p3 }
  0x1c   : > { %1309 = shalt.err (!%p1306_p5)
}
  0x1d   : > { %s1399_s7 = smov [#allocation5]   ;;  %s1310_s8 = scalar_lea.vmem %s142_s29, 16 }
  0x1e   : > { %1245 = dma.vmem_to_smem (!%p1487_p12), %s131_s26, 16, %s1399_s7, [#allocation4]  }
  0x1f   : > { %p1311_p4 = scmp.ne.s32.totalorder %s142_s29, %s1310_s8  ;;  %p1318_p9 = scmp.lt.s32.totalorder %s142_s29, %s142_s29 }
  0x20   : > { %p1319_p13 = scmp.lt.s32.totalorder %s1310_s8, %s1310_s8 }
  0x21   : > { %p1313_p11 = pnand %p1311_p4, %p1297_p1 }
  0x22   : > { %p1320_p0 = por %p1319_p13, %p1318_p9 }
  0x23   : > { %p1314_p8 = pneg %p1313_p11 }
  0x25   : > { %p1321_p2 = pnand %p1320_p0, %p1314_p8 }
  0x27   : > { %1324 = shalt.err (!%p1321_p2)
}
  0x28   : > { %s1400_s9 = smov [#allocation6]   ;;  %s1094_s10 = sshll.u32 %s152_s5, 6 }
  0x29   : > { %1248 = dma.vmem_to_smem (!%p1487_p12), %s142_s29, 16, %s1400_s9, [#allocation7]  }
  0x2a   : > { %s1230_s11 = sshll.u32 %s1397_s15, 10  ;;  %s156_s21 = scalar_lea.vmem [#allocation2], %s1094_s10 }
  0x2b   : > { %s1510_s19 = scalar_lea.hbm %s2211_s0, %s1230_s11  ;;  %s163_s24 = sshll.u32 %s156_s21, 4  ;;  %s1512_s24 = int_to_ptr.vmem [resolvable:$true] %s163_s24 }
  0x2c   : > { %s1516_s25 = scalar_lea.sflag [#allocation3], %s152_s5  ;;  %s1325_s26 = scalar_lea.hbm %s1510_s19, 1024 }
  0x2d   : > { %p1326_p5 = scmp.ne.s32.totalorder %s1510_s19, %s1325_s26  ;;  %p2224_p8 = scmp.ne.s32.totalorder %s2223_s4, 0 }
  0x2e   : > { %s1330_s28 = scalar_lea.hbm %s2211_s0, 2048  ;;  %p1331_p1 = scmp.lt.u32.totalorder %s1510_s19, %s2211_s0 }
  0x2f   : > { %p1327_p9 = pneg %p2224_p8  ;;  %p1332_p3 = scmp.lt.u32.totalorder %s1330_s28, %s1325_s26 }
  0x30   : > { %p1334_p7 = scmp.lt.u32.totalorder %s1325_s26, %s1510_s19 }
  0x31   : > { %p1328_p12 = pnand %p1327_p9, %p1326_p5  ;;  %p1333_p6 = por %p1332_p3, %p1331_p1 }
  0x33   : > { %p1329_p13 = pneg %p1328_p12  ;;  %p1335_p10 = por %p1334_p7, %p1333_p6 }
  0x35   : > { %p1336_p4 = pnand %p1335_p10, %p1329_p13 }
  0x37   : > { %1339 = shalt.err (!%p1336_p4)
}
  0x38   : > { %s1340_s5 = scalar_lea.vmem %s1512_s24, 1024  ;;  %s1401_s6 = smov [#allocation2]  }
  0x39   : > { %p1341_p11 = scmp.ne.s32.totalorder %s1512_s24, %s1340_s5  ;;  %s1345_s7 = sshll.u32 %s1401_s6, 4  ;;  %s1346_s7 = int_to_ptr.vmem [resolvable:$false] %s1345_s7 }
  0x3a   : > { %s1347_s8 = scalar_lea.vmem %s1346_s7, 2048  ;;  %p1348_p5 = scmp.lt.s32.totalorder %s1512_s24, %s1346_s7 }
  0x3b   : > { %p1343_p0 = pnand %p1341_p11, %p1327_p9  ;;  %p1349_p12 = scmp.lt.s32.totalorder %s1347_s8, %s1340_s5 }
  0x3d   : > { %p1344_p2 = pneg %p1343_p0  ;;  %p1350_p1 = por %p1349_p12, %p1348_p5 }
  0x3f   : > { %p1351_p3 = pnand %p1350_p1, %p1344_p2 }
  0x41   : > { %1354 = shalt.err (!%p1351_p3)
}
  0x42   : > { %s1402_s9 = smov 128   ;;  %s1403_s10 = smov 8  }
  0x43   : > { %1252 = dma.hbm_to_vmem [thread:$0]  (!%p2224_p8), %s1510_s19, 1024, %s1512_s24, %s1516_s25, %s1402_s9, %s1402_s9, %s1403_s10  }
  0x44   : > { %p2225_p9 = scmp.ne.s32.totalorder %s2221_s23, 0 }
  0x45   : > { %s177_s11 = sand.u32 (!%p2225_p9), 1, %s1389_s13   ;;  %p2226_p13 = scmp.ne.s32.totalorder (!%p2225_p9), %s2220_s22, 0 }
  0x46   : > { %175 = sbr.rel (%p2225_p9) target bundleno = 315 (0x13b), region = 32  ;;  %s1098_s12 = sshll.u32 (!%p2225_p9), %s177_s11, 6 }
  0x47   : > { %s178_s18 = scalar_lea.sflag (!%p2225_p9), [#allocation3], %s177_s11  ;;  %s1547_s21 = scalar_lea.vmem (!%p2225_p9), [#allocation2], %s1098_s12 }
  0x4d   : > { %1372 = dma.done.wait (%p2226_p13), %s178_s18, 1024  }
  0x4e   : > { %1374 = vsyncadd (%p2226_p13), %s178_s18, 4294966272  ;;  %p2227_p6 = scmp.eq.s32.totalorder %s1444_s16, 0 }
  0x50   : > { %1376 = dma.done.wait (%p2227_p6), [#allocation4], 16   ;;  %p2228_p8 = pmov %p2227_p6 }
  0x51   : > { %p2229_p7 = pmov %p2227_p6 }
  0x52   : > { %1378 = vsyncadd (%p2228_p8), [#allocation4], 4294967280 }
  0x53   : > { %1380 = dma.done.wait (%p2229_p7), [#allocation7], 16   ;;  %p2230_p10 = pmov %p2227_p6 }
  0x55   : > { %1382 = vsyncadd (%p2230_p10), [#allocation7], 4294967280 }
  0x56   : > { %194 = sfence }
  0x57   : > { %s1185_s23 = sld [smem:[#allocation5 + $0xf]]  ;;  %s1182_s4 = sld [smem:[#allocation5 + $0x6]]  ;;  %v1562_v0 = vld [vmem:[%s1547_s21] sm:$0xff]  ;;  %v1565_v1 = vld [vmem:[%s1547_s21 + $0x8] sm:$0x7f]  ;;  %v1591_v18 = vld [vmem:[%s1547_s21 + $0x10] sm:$0xff] }
  0x58   : > { %s671_s22 = sld [smem:[#allocation5]]  ;;  %s1187_s19 = sld [smem:[#allocation5 + $0x9]]  ;;  %v1574_v8 = vld [vmem:[%s1547_s21 + $0x9] sm:$0x7f]  ;;  %v1577_v10 = vld [vmem:[%s1547_s21 + $0x1] sm:$0xff]  ;;  %v1605_v26 = vld [vmem:[%s1547_s21 + $0x11] sm:$0xff] }
  0x59   : > { %s1404_s24 = smov 127   ;;  %s1193_s25 = sld [smem:[#allocation5 + $0x18]]  ;;  %v1588_v16 = vld [vmem:[%s1547_s21 + $0x18] sm:$0x7f]  ;;  %v1616_v32 = vld [vmem:[%s1547_s21 + $0x8] sm:$0xff]  ;;  %v1630_v41 = vld [vmem:[%s1547_s21 + $0x20] sm:$0xff] }
  0x5a   : > { %s1197_s26 = sld [smem:[#allocation5 + $0x21]]  ;;  %s1195_s15 = sld [smem:[#allocation5 + $0x12]]  ;;  %v1602_v24 = vld [vmem:[%s1547_s21 + $0x19] sm:$0x7f]  ;;  %v1627_v39 = vld [vmem:[%s1547_s21 + $0x28] sm:$0x7f] }
  0x5b   : > { %s1199_s27 = sld [smem:[#allocation5 + $0x1b]]  ;;  %s1124_s29 = sld [smem:[#allocation5 + $0xc]]  ;;  %v1641_v47 = vld [vmem:[%s1547_s21 + $0x18] sm:$0xff]  ;;  %v1658_v54 = vld [vmem:[%s1547_s21 + $0x29] sm:$0x7f]  ;;  %v1663_v56 = vld [vmem:[%s1547_s21 + $0x21] sm:$0xff] }
  0x5c   : > { %s1122_s28 = sld [smem:[#allocation5 + $0x3]]  ;;  %s1205_s30 = sld [smem:[#allocation5 + $0x2a]]  ;;  %v1681_v60 = vld [vmem:[%s1547_s21 + $0x28] sm:$0xff]  ;;  %vm624_vm0 = vcmask 129024   ;;  %vm289_vm1 = vcmask 130048   ;;  %vm484_vm2 = vcmask 121856  }
  0x5d   : > { %v692_v2 = vstv %s1185_s23  ;;  %v652_v4 = vstv %s1182_s4  ;;  %s1209_s5 = sld [smem:[#allocation5 + $0x33]]  ;;  %s1128_s6 = sld [smem:[#allocation5 + $0x15]]  ;;  %vm987_vm3 = vcmask 120832  }
  0x5e   : > { %v693_v3 = vmul.f32 %v692_v2, %v1562_v0  ;;  %v653_v5 = vmul.f32 %v652_v4, %v1562_v0  ;;  %v694_v6 = vmul.f32 %v692_v2, %v1565_v1  ;;  %v654_v7 = vmul.f32 %v652_v4, %v1565_v1  ;;  %s1130_s7 = sld [smem:[#allocation5 + $0x1e]]  ;;  %s1207_s8 = sld [smem:[#allocation5 + $0x24]]  ;;  %v1690_v2 = vld [vmem:[%s1547_s21 + $0x38] sm:$0x7f] }
  0x5f   : > { %v672_v9 = vstv %s671_s22  ;;  %v712_v13 = vstv %s1187_s19  ;;  %v736_v17 = vstv %s1193_s25  ;;  %s1647_s9 = sld [smem:[#allocation5 + $0x2d]]  ;;  %s1649_s10 = sld [smem:[#allocation5 + $0x27]] }
  0x60   : > { %697 = vrot.lane.b32.xlu1 %v693_v3, %s1404_s24  ;;  %657 = vrot.lane.b32.xlu0 %v653_v5, %s1404_s24  ;;  %v674_v11 = vmul.f32 %v672_v9, %v1574_v8  ;;  %v673_v12 = vmul.f32 %v672_v9, %v1577_v10  ;;  %v714_v14 = vmul.f32 %v712_v13, %v1574_v8  ;;  %v776_v21 = vstv %s1197_s26  ;;  %s1653_s11 = sld [smem:[#allocation5 + $0x30]]  ;;  %s1660_s12 = sld [smem:[#allocation5 + $0x3c]]  ;;  %v1698_v5 = vld [vmem:[%s1547_s21 + $0x30] sm:$0xff] }
  0x61   : > { %v713_v15 = vmul.f32 %v712_v13, %v1577_v10  ;;  %v738_v19 = vmul.f32 %v1588_v16, %v736_v17  ;;  %v737_v20 = vmul.f32 %v1591_v18, %v736_v17  ;;  %v778_v22 = vmul.f32 %v1588_v16, %v776_v21  ;;  %s1665_s18 = sld [smem:[#allocation5 + $0x45]]  ;;  %s1667_s23 = sld [smem:[#allocation5 + $0x39]]  ;;  %v1707_v9 = vld [vmem:[%s1547_s21 + $0x38] sm:$0xff] }
  0x62   : > { %v777_v23 = vmul.f32 %v1591_v18, %v776_v21  ;;  %v756_v25 = vstv %s1195_s15  ;;  %v796_v29 = vstv %s1199_s27  ;;  %v316_v33 = vstv %s1122_s28  ;;  %s1669_s4 = sld [smem:[#allocation5 + $0x42]]  ;;  %s1671_s22 = sld [smem:[#allocation5 + $0x36]] }
  0x63   : > { %v758_v27 = vmul.f32 %v1602_v24, %v756_v25  ;;  %v757_v28 = vmul.f32 %v1605_v26, %v756_v25  ;;  %v798_v30 = vmul.f32 %v1602_v24, %v796_v29  ;;  %v797_v31 = vmul.f32 %v1605_v26, %v796_v29  ;;  %s1675_s19 = sld [smem:[#allocation5 + $0x3f]]  ;;  %s1684_s25 = sld [smem:[#allocation6 + $0x1]] }
  0x64   : > { %699 = vrot.lane.b32.xlu1 %v694_v6, %s1404_s24  ;;  %659 = vrot.lane.b32.xlu0 %v654_v7, %s1404_s24  ;;  %v318_v34 = vmul.f32 %v316_v33, %v1616_v32  ;;  %v317_v35 = vmul.f32 %v1562_v0, %v316_v33  ;;  %v336_v36 = vstv %s1124_s29  ;;  %v820_v40 = vstv %s1205_s30  ;;  %s1692_s26 = sld [smem:[#allocation6]]  ;;  %s1700_s15 = sld [smem:[#allocation5 + $0x7]] }
  0x65   : > { %v338_v37 = vmul.f32 %v336_v36, %v1616_v32  ;;  %v337_v38 = vmul.f32 %v1562_v0, %v336_v36  ;;  %v822_v42 = vmul.f32 %v1627_v39, %v820_v40  ;;  %v821_v43 = vmul.f32 %v1630_v41, %v820_v40  ;;  %s1702_s27 = sld [smem:[#allocation5 + $0x10]]  ;;  %s1720_s28 = sld [smem:[#allocation5 + $0x1]] }
  0x66   : > { %v860_v44 = vstv %s1209_s5  ;;  %v358_v48 = vstv %s1128_s6  ;;  %v378_v51 = vstv %s1130_s7  ;;  %v840_v55 = vstv %s1207_s8  ;;  %s1722_s29 = sld [smem:[#allocation5 + $0xa]]  ;;  %s1746_s30 = sld [smem:[#allocation5 + $0x19]] }
  0x67   : > { %v862_v45 = vmul.f32 %v1627_v39, %v860_v44  ;;  %v861_v46 = vmul.f32 %v1630_v41, %v860_v44  ;;  %v360_v49 = vmul.f32 %v1641_v47, %v358_v48  ;;  %v359_v50 = vmul.f32 %v1591_v18, %v358_v48  ;;  %s1748_s5 = sld [smem:[#allocation5 + $0x22]]  ;;  %s1771_s6 = sld [smem:[#allocation5 + $0x13]] }
  0x68   : > { %679 = vrot.lane.b32.xlu1 %v674_v11, %s1404_s24  ;;  %677 = vrot.lane.b32.xlu0 %v673_v12, %s1404_s24  ;;  %v380_v52 = vmul.f32 %v1641_v47, %v378_v51  ;;  %v379_v53 = vmul.f32 %v1591_v18, %v378_v51  ;;  %v842_v57 = vmul.f32 %v1658_v54, %v840_v55  ;;  %v880_v59 = vstv %s1647_s9  ;;  %v1711_v12 = vld [vmem:[%s1547_s21 + $0x39] sm:$0x7f]  ;;  %s1773_s7 = sld [smem:[#allocation5 + $0x1c]]  ;;  %s1788_s8 = sld [smem:[#allocation5 + $0x2b]] }
  0x69   : > { %v841_v58 = vmul.f32 %v1663_v56, %v840_v55  ;;  %v400_v61 = vstv %s1649_s10  ;;  %v882_v62 = vmul.f32 %v1658_v54, %v880_v59  ;;  %v420_v63 = vstv %s1653_s11  ;;  %s1790_s9 = sld [smem:[#allocation5 + $0x25]]  ;;  %s1799_s10 = sld [smem:[#allocation5 + $0x34]] }
  0x6a   : > { %v881_v3 = vmul.f32 %v1663_v56, %v880_v59  ;;  %v904_v4 = vstv %s1660_s12  ;;  %v402_v6 = vmul.f32 %v1681_v60, %v400_v61  ;;  %v944_v7 = vstv %s1665_s18  ;;  %s1801_s11 = sld [smem:[#allocation5 + $0x2e]]  ;;  %s1809_s12 = sld [smem:[#allocation5 + $0x3d]] }
  0x6b   : > { %v442_v11 = vstv %s1667_s23  ;;  %v401_v13 = vmul.f32 %v1630_v41, %v400_v61  ;;  %v924_v17 = vstv %s1671_s22  ;;  %v1727_v21 = vmul.f32 %v1690_v2, %v904_v4  ;;  %s1811_s18 = sld [smem:[#allocation5 + $0x37]]  ;;  %s1822_s23 = sld [smem:[#allocation5 + $0x46]] }
  0x6c   : > { %719 = vrot.lane.b32.xlu1 %v714_v14, %s1404_s24  ;;  %717 = vrot.lane.b32.xlu0 %v713_v15, %s1404_s24  ;;  %v422_v14 = vmul.f32 %v1681_v60, %v420_v63  ;;  %v462_v15 = vstv %s1669_s4  ;;  %v1735_v25 = vmul.f32 %v1690_v2, %v944_v7  ;;  %v1744_v29 = vmul.f32 %v1698_v5, %v442_v11  ;;  %s1824_s4 = sld [smem:[#allocation5 + $0x40]]  ;;  %s1831_s22 = sld [smem:[#allocation5 + $0x4]] }
  0x6d   : > { %v1757_v33 = vmul.f32 %v1711_v12, %v924_v17  ;;  %v1766_v36 = vstv %s1684_s25  ;;  %v519_v40 = vstv %s1702_s27  ;;  %v1784_v48 = vstv %s1692_s26  ;;  %s1843_s25 = sld [smem:[#allocation5 + $0x16]]  ;;  %p213_p4 = scmp.lt.s32.totalorder %s1444_s16, 1 }
  0x6e   : > { %v525_v51 = vstv %s1722_s29  ;;  %s1863_s26 = sld [smem:[#allocation5 + $0x1f]]  ;;  %s1881_s27 = sld [smem:[#allocation5 + $0x3a]] }
  0x6f   : > { %s2236_s16 = smov (!%p213_p4, %s1444_s16), 1 }
  0x70   : > { %743 = vrot.lane.b32.xlu1 %v738_v19, %s1404_s24  ;;  %741 = vrot.lane.b32.xlu0 %v737_v20, %s1404_s24  ;;  %v1718_v19 = vld [vmem:[%s1547_s21 + $0x31] sm:$0xff]  ;;  %v421_v20 = vmul.f32 %v1630_v41, %v420_v63  ;;  %s1231_s29 = sshll.u32 %s2236_s16, 7  ;;  %s1929_s16 = sld [smem:[#allocation5 + $0x11]] }
  0x74   : > { %783 = vrot.lane.b32.xlu1 %v778_v22, %s1404_s24  ;;  %781 = vrot.lane.b32.xlu0 %v777_v23, %s1404_s24  ;;  %v1730_v22 = vmul.f32 %v1698_v5, %v904_v4  ;;  %v964_v23 = vstv %s1675_s19  ;;  %s1841_s19 = sld [smem:[#allocation5 + $0xd]] }
  0x78   : > { %763 = vrot.lane.b32.xlu1 %v758_v27, %s1404_s24  ;;  %761 = vrot.lane.b32.xlu0 %v757_v28, %s1404_s24  ;;  %v1738_v27 = vmul.f32 %v1698_v5, %v944_v7  ;;  %v1741_v28 = vmul.f32 %v1707_v9, %v442_v11  ;;  %v535_v7 = vstv %s1746_s30  ;;  %v547_v11 = vstv %s1748_s5  ;;  %s2124_s30 = sld [smem:[#allocation5 + $0x3b]]  ;;  %s2135_s5 = sld [smem:[#allocation5 + $0x44]] }
  0x7c   : > { %803 = vrot.lane.b32.xlu1 %v798_v30, %s1404_s24  ;;  %801 = vrot.lane.b32.xlu0 %v797_v31, %s1404_s24  ;;  %v1751_v30 = vmul.f32 %v1707_v9, %v462_v15  ;;  %v1754_v31 = vmul.f32 %v1698_v5, %v462_v15 }
  0x80   : > { %323 = vrot.lane.b32.xlu1 %v318_v34, %s1404_s24  ;;  %321 = vrot.lane.b32.xlu0 %v317_v35, %s1404_s24  ;;  %v1760_v34 = vmul.f32 %v1718_v19, %v924_v17  ;;  %v1763_v35 = vmul.f32 %v1711_v12, %v964_v23  ;;  %v536_v17 = vmul.f32 %v1591_v18, %v535_v7 }
  0x84   : > { %343 = vrot.lane.b32.xlu1 %v338_v37, %s1404_s24  ;;  %341 = vrot.lane.b32.xlu0 %v337_v38, %s1404_s24  ;;  %v503_v37 = vld [vmem:[%s1547_s21 + $0x8] sm:$0x7f]  ;;  %v507_v38 = vstv %s1700_s15  ;;  %s1865_s15 = sld [smem:[#allocation5 + $0x28]] }
  0x85   : > { %v508_v44 = vmul.f32 %v1562_v0, %v507_v38 }
  0x88   : > { %827 = vrot.lane.b32.xlu1 %v822_v42, %s1404_s24  ;;  %825 = vrot.lane.b32.xlu0 %v821_v43, %s1404_s24  ;;  %v1777_v42 = vmul.f32 %v1718_v19, %v964_v23  ;;  %v505_v43 = vld [vmem:[%s1547_s21 + $0x9] sm:$0x7f] }
  0x89   : > { %v527_v63 = vmul.f32 %v525_v51, %v505_v43 }
  0x8c   : > { %867 = vrot.lane.b32.xlu1 %v862_v45, %s1404_s24  ;;  %865 = vrot.lane.b32.xlu0 %v861_v46, %s1404_s24  ;;  %v509_v45 = vmul.f32 %v507_v38, %v503_v37  ;;  %v520_v46 = vmul.f32 %v1562_v0, %v519_v40 }
  0x8e   : > { %v522_v59 = vadd.f32 %v1766_v36, %v520_v46  ;;  %v1161_v46 = vld [vmem:[%s1547_s21 + $0x28] sm:$0x7f] }
  0x90   : > { %365 = vrot.lane.b32.xlu1 %v360_v49, %s1404_s24  ;;  %363 = vrot.lane.b32.xlu0 %v359_v50, %s1404_s24  ;;  %v513_v49 = vstv %s1720_s28  ;;  %v521_v50 = vmul.f32 %v519_v40, %v503_v37  ;;  %v548_v37 = vmul.f32 %v1591_v18, %v547_v11  ;;  %v553_v40 = vstv %s1773_s7  ;;  %s1892_s28 = sld [smem:[#allocation5 + $0x43]] }
  0x91   : > { %v514_v55 = vmul.f32 %v1577_v10, %v513_v49  ;;  %s1937_s7 = sld [smem:[#allocation5 + $0xb]] }
  0x92   : > { %v523_v61 = vadd.f32 %v1766_v36, %v521_v50 }
  0x94   : > { %385 = vrot.lane.b32.xlu1 %v380_v52, %s1404_s24  ;;  %383 = vrot.lane.b32.xlu0 %v379_v53, %s1404_s24  ;;  %v510_v52 = vadd.f32 %v1784_v48, %v508_v44  ;;  %v511_v53 = vadd.f32 %v1784_v48, %v509_v45  ;;  %v529_v15 = vadd.f32 %v527_v63, %v523_v61 }
  0x98   : > { %847 = vrot.lane.b32.xlu1 %v842_v57, %s1404_s24  ;;  %845 = vrot.lane.b32.xlu0 %v841_v58, %s1404_s24  ;;  %v515_v57 = vmul.f32 %v513_v49, %v505_v43  ;;  %v1153_v58 = vld [vmem:[%s1547_s21 + $0x18] sm:$0x7f] }
  0x99   : > { %v537_v23 = vmul.f32 %v1153_v58, %v535_v7  ;;  %v549_v38 = vmul.f32 %v1153_v58, %v547_v11  ;;  %v563_v58 = vstv %s1788_s8  ;;  %v581_v7 = vstv %s1801_s11  ;;  %s1939_s8 = sld [smem:[#allocation5 + $0x2]]  ;;  %s1971_s11 = sld [smem:[#allocation5 + $0x14]] }
  0x9a   : > { %v517_v4 = vadd.f32 %v515_v57, %v511_v53  ;;  %v1163_v53 = vld [vmem:[%s1547_s21 + $0x29] sm:$0x7f]  ;;  %v565_v63 = vmul.f32 %v1161_v46, %v563_v58 }
  0x9b   : > { %v551_v50 = vadd.f32 %v549_v38, %v529_v15  ;;  %v597_v38 = vstv %s1811_s18  ;;  %s1986_s18 = sld [smem:[#allocation5 + $0x2c]] }
  0x9c   : > { %887 = vrot.lane.b32.xlu1 %v882_v62, %s1404_s24  ;;  %885 = vrot.lane.b32.xlu0 %v881_v3, %s1404_s24  ;;  %v526_v62 = vmul.f32 %v1577_v10, %v525_v51  ;;  %v516_v3 = vadd.f32 %v514_v55, %v510_v52  ;;  %v539_v44 = vadd.f32 %v537_v23, %v517_v4  ;;  %v1171_v23 = vld [vmem:[%s1547_s21 + $0x39] sm:$0x7f] }
  0x9d   : > { %v554_v51 = vmul.f32 %v1605_v26, %v553_v40 }
  0x9e   : > { %v538_v43 = vadd.f32 %v536_v17, %v516_v3 }
  0xa0   : > { %407 = vrot.lane.b32.xlu1 %v402_v6, %s1404_s24  ;;  %405 = vrot.lane.b32.xlu0 %v401_v13, %s1404_s24  ;;  %v1155_v6 = vld [vmem:[%s1547_s21 + $0x19] sm:$0x7f]  ;;  %v528_v13 = vadd.f32 %v526_v62, %v522_v59  ;;  %v564_v62 = vmul.f32 %v1630_v41, %v563_v58 }
  0xa1   : > { %v555_v52 = vmul.f32 %v1155_v6, %v553_v40 }
  0xa2   : > { %v550_v49 = vadd.f32 %v548_v37, %v528_v13  ;;  %v583_v37 = vmul.f32 %v1163_v53, %v581_v7 }
  0xa3   : > { %v557_v61 = vadd.f32 %v555_v52, %v551_v50  ;;  %v599_v50 = vmul.f32 %v1171_v23, %v597_v38  ;;  %v603_v52 = vstv %s1822_s23  ;;  %s1994_s23 = sld [smem:[#allocation5 + $0x35]] }
  0xa4   : > { %427 = vrot.lane.b32.xlu1 %v422_v14, %s1404_s24  ;;  %425 = vrot.lane.b32.xlu0 %v421_v20, %s1404_s24  ;;  %v541_v14 = vstv %s1771_s6  ;;  %v556_v59 = vadd.f32 %v554_v51, %v550_v49  ;;  %v598_v49 = vmul.f32 %v1718_v19, %v597_v38  ;;  %v604_v58 = vmul.f32 %v1698_v5, %v603_v52  ;;  %s1904_s6 = scalar_lea.vmem %s2214_s3, %s1231_s29  ;;  %s2114_s29 = sld [smem:[#allocation5 + $0x32]] }
  0xa5   : > { %v542_v20 = vmul.f32 %v1605_v26, %v541_v14  ;;  %v543_v45 = vmul.f32 %v1155_v6, %v541_v14  ;;  %v575_v6 = vstv %s1799_s10  ;;  %v582_v14 = vmul.f32 %v1663_v56, %v581_v7  ;;  %s1957_s10 = sld [smem:[#allocation5 + $0x23]] }
  0xa6   : > { %v576_v15 = vmul.f32 %v1630_v41, %v575_v6  ;;  %v577_v17 = vmul.f32 %v1161_v46, %v575_v6 }
  0xa7   : > { %v544_v55 = vadd.f32 %v542_v20, %v538_v43  ;;  %v545_v57 = vadd.f32 %v543_v45, %v539_v44 }
  0xa8   : > { %911 = vrot.lane.b32.xlu1 %v1727_v21, %s1404_s24  ;;  %909 = vrot.lane.b32.xlu0 %v1730_v22, %s1404_s24  ;;  %v569_v21 = vstv %s1790_s9  ;;  %v1169_v22 = vld [vmem:[%s1547_s21 + $0x38] sm:$0x7f]  ;;  %v578_v44 = vadd.f32 %v576_v15, %v556_v59  ;;  %v579_v20 = vadd.f32 %v577_v17, %v557_v61  ;;  %s1950_s9 = sld [smem:[#allocation5 + $0x1a]] }
  0xa9   : > { %v570_v3 = vmul.f32 %v1663_v56, %v569_v21  ;;  %v571_v4 = vmul.f32 %v1163_v53, %v569_v21  ;;  %v566_v11 = vadd.f32 %v564_v62, %v544_v55  ;;  %v567_v13 = vadd.f32 %v565_v63, %v545_v57  ;;  %v222_v59 = vld [vmem:[%s1547_s21] sm:$0xff]  ;;  %s1879_s21 = sld [smem:[#allocation5 + $0x31]] }
  0xaa   : > { %v585_v51 = vadd.f32 %v583_v37, %v579_v20  ;;  %v609_v53 = vstv %s1824_s4  ;;  %v605_v21 = vmul.f32 %v1169_v22, %v603_v52  ;;  %v225_v62 = vstv %s1831_s22  ;;  %s2013_s4 = sld [smem:[#allocation5 + $0x26]]  ;;  %s2019_s22 = sld [smem:[#allocation5 + $0x2f]] }
  0xab   : > { %v572_v40 = vadd.f32 %v570_v3, %v566_v11  ;;  %v573_v43 = vadd.f32 %v571_v4, %v567_v13  ;;  %v611_v61 = vmul.f32 %v1171_v23, %v609_v53  ;;  %v226_v6 = vmul.f32 %v225_v62, %v222_v59 }
  0xac   : > { %951 = vrot.lane.b32.xlu1 %v1735_v25, %s1404_s24  ;;  %949 = vrot.lane.b32.xlu0 %v1738_v27, %s1404_s24  ;;  %v591_v25 = vstv %s1809_s12  ;;  %v584_v27 = vadd.f32 %v582_v14, %v578_v44  ;;  %v607_v4 = vadd.f32 %v605_v21, %v585_v51  ;;  %v227_v7 = vmul.f32 %v1616_v32, %v225_v62  ;;  %s1978_s12 = sld [smem:[#allocation5 + $0x1d]] }
  0xad   : > { %v592_v45 = vmul.f32 %v1698_v5, %v591_v25  ;;  %v593_v46 = vmul.f32 %v1169_v22, %v591_v25  ;;  %v231_v22 = vstv %s1841_s19  ;;  %v240_v11 = vstv %s1843_s25  ;;  %s1121_s19 = sld [smem:[#allocation5 + $0x5]]  ;;  %s2044_s25 = sld [smem:[#allocation5 + $0x3e]] }
  0xae   : > { %v606_v3 = vadd.f32 %v604_v58, %v584_v27  ;;  %v613_v15 = vadd.f32 %v611_v61, %v607_v4  ;;  %v229_v14 = vadd.f32 %v1784_v48, %v227_v7  ;;  %v232_v37 = vmul.f32 %v231_v22, %v222_v59 }
  0xaf   : > { %v594_v55 = vadd.f32 %v592_v45, %v572_v40  ;;  %v595_v57 = vadd.f32 %v593_v46, %v573_v43  ;;  %v233_v25 = vmul.f32 %v1616_v32, %v231_v22  ;;  %v241_v45 = vmul.f32 %v1591_v18, %v240_v11 }
  0xb0   : > { %449 = vrot.lane.b32.xlu1 %v1741_v28, %s1404_s24  ;;  %447 = vrot.lane.b32.xlu0 %v1744_v29, %s1404_s24  ;;  %v610_v28 = vmul.f32 %v1718_v19, %v609_v53  ;;  %v234_v44 = vadd.f32 %v1766_v36, %v232_v37  ;;  %v242_v46 = vmul.f32 %v1641_v47, %v240_v11  ;;  %v246_v53 = vstv %s1863_s26  ;;  %s2048_s26 = sld [smem:[#allocation5 + $0xe]] }
  0xb1   : > { %v600_v29 = vadd.f32 %v598_v49, %v594_v55  ;;  %v601_v63 = vadd.f32 %v599_v50, %v595_v57  ;;  %v235_v20 = vadd.f32 %v1766_v36, %v233_v25  ;;  %v255_v55 = vstv %s1865_s15  ;;  %s2057_s15 = sld [smem:[#allocation5 + $0x47]] }
  0xb2   : > { %v612_v13 = vadd.f32 %v610_v28, %v606_v3  ;;  %v248_v28 = vmul.f32 %v1641_v47, %v246_v53  ;;  %v256_v61 = vmul.f32 %v1630_v41, %v255_v55  ;;  %v257_v62 = vmul.f32 %v1681_v60, %v255_v55 }
  0xb3   : > { %v614_v17 = vadd.f32 3.0, %v600_v29  ;;  %v615_v23 = vadd.f32 3.0, %v601_v63  ;;  %v261_v63 = vstv %s1879_s21  ;;  %v270_v3 = vstv %s1881_s27  ;;  %s2065_s21 = sld [smem:[#allocation5 + $0x17]]  ;;  %s2076_s27 = sld [smem:[#allocation5 + $0x20]] }
  0xb4   : > { %469 = vrot.lane.b32.xlu1 %v1751_v30, %s1404_s24  ;;  %467 = vrot.lane.b32.xlu0 %v1754_v31, %s1404_s24  ;;  %v228_v30 = vadd.f32 %v1784_v48, %v226_v6  ;;  %v626_v43 = vadd.f32 3.0, %v612_v13  ;;  %v627_v31 = vadd.f32 3.0, %v613_v15  ;;  %v250_v6 = vadd.f32 %v248_v28, %v235_v20 }
  0xb5   : > { %v616_v38 = vmax.f32 %v614_v17, 0.0  ;;  %v617_v40 = vmax.f32 %v615_v23, 0.0  ;;  %v262_v11 = vmul.f32 %v1630_v41, %v261_v63  ;;  %v263_v13 = vmul.f32 %v1681_v60, %v261_v63 }
  0xb6   : > { %v628_v27 = vmax.f32 %v626_v43, 0.0  ;;  %v629_v51 = vmax.f32 %v627_v31, 0.0  ;;  %v243_v52 = vadd.f32 %v241_v45, %v228_v30  ;;  %v271_v15 = vmul.f32 %v1698_v5, %v270_v3 }
  0xb7   : > { %v618_v49 = vmin.f32 %v616_v38, 6.0  ;;  %v619_v50 = vmin.f32 %v617_v40, 6.0  ;;  %v276_v17 = vstv %s1892_s28  ;;  %v265_v30 = vadd.f32 %v263_v13, %v250_v6  ;;  %s2092_s28 = sld [smem:[#allocation5 + $0x29]] }
  0xb8   : > { %931 = vrot.lane.b32.xlu1 %v1757_v33, %s1404_s24  ;;  %929 = vrot.lane.b32.xlu0 %v1760_v34, %s1404_s24  ;;  %v244_v33 = vadd.f32 %v242_v46, %v229_v14  ;;  %v630_v21 = vmin.f32 %v628_v27, 6.0  ;;  %v631_v59 = vmin.f32 %v629_v51, 6.0  ;;  %v247_v34 = vmul.f32 %v1591_v18, %v246_v53 }
  0xb9   : > { %v620_v57 = vmul.f32 0.16666667, %v618_v49  ;;  %v621_v58 = vmul.f32 0.16666667, %v619_v50  ;;  %v258_v7 = vadd.f32 %v256_v61, %v243_v52  ;;  %v277_v25 = vmul.f32 %v1698_v5, %v276_v17 }
  0xba   : > { %v633_v29 = vmul.f32 0.16666667, %v631_v59  ;;  %v249_v4 = vadd.f32 %v247_v34, %v234_v44  ;;  %v259_v22 = vadd.f32 %v257_v62, %v244_v33  ;;  %v278_v38 = vmul.f32 %v1707_v9, %v276_v17 }
  0xbb   : > { %1177 = vst.msk [vmem:[%s1904_s6 + $0x28] sm:$0x7f] %vm624_vm0, %v621_v58  ;;  %v273_v14 = vadd.f32 %v271_v15, %v258_v7  ;;  %v686_v59 = vstv %s1929_s16  ;;  %v730_v13 = vstv %s1950_s9  ;;  %s2151_s16 = sld [smem:[#allocation5 + $0x38]] }
  0xbc   : > { %971 = vrot.lane.b32.xlu1 %v1763_v35, %s1404_s24  ;;  %969 = vrot.lane.b32.xlu0 %v1777_v42, %s1404_s24  ;;  %v632_v35 = vmul.f32 0.16666667, %v630_v21  ;;  %v272_v42 = vmul.f32 %v1707_v9, %v270_v3  ;;  %1179 = vst.msk [vmem:[%s1904_s6 + $0x68] sm:$0x7f] %vm624_vm0, %v633_v29  ;;  %v264_v23 = vadd.f32 %v262_v11, %v249_v4  ;;  %s1931_s24 = sld [smem:[#allocation5 + $0x8]]  ;;  %v706_v3 = vstv %s1937_s7 }
  0xbd   : > { %1176 = vst.msk [vmem:[%s1904_s6 + $0x20] sm:$0xff] %vm289_vm1, %v620_v57  ;;  %v281_v40 = vadd.f32 3.0, %v273_v14  ;;  %v280_v44 = vadd.f32 %v278_v38, %v265_v30  ;;  %v688_v28 = vmul.f32 %v686_v59, %v1565_v1  ;;  %v666_v4 = vstv %s1939_s8 }
  0xbe   : > { %v274_v37 = vadd.f32 %v272_v42, %v259_v22  ;;  %1178 = vst.msk [vmem:[%s1904_s6 + $0x60] sm:$0xff] %vm289_vm1, %v632_v35  ;;  %v279_v31 = vadd.f32 %v277_v25, %v264_v23  ;;  %v708_v6 = vmul.f32 %v706_v3, %v1574_v8  ;;  %v732_v30 = vmul.f32 %v1588_v16, %v730_v13 }
  0xbf   : > { %v283_v20 = vmax.f32 %v281_v40, 0.0  ;;  %v293_v49 = vadd.f32 3.0, %v280_v44  ;;  %v690_v29 = vadd.f32 %v688_v28, %v1766_v36  ;;  %v770_v14 = vstv %s1957_s10 }
  0xc0   : > { %v282_v43 = vadd.f32 3.0, %v274_v37  ;;  %v292_v46 = vadd.f32 3.0, %v279_v31  ;;  %v772_v25 = vmul.f32 %v1588_v16, %v770_v14  ;;  %v854_v28 = vstv %s1994_s23 }
  0xc1   : > { %v285_v50 = vmin.f32 %v283_v20, 6.0  ;;  %v295_v52 = vmax.f32 %v293_v49, 0.0  ;;  %v790_v49 = vstv %s1978_s12 }
  0xc2   : > { %v284_v45 = vmax.f32 %v282_v43, 0.0  ;;  %v294_v51 = vmax.f32 %v292_v46, 0.0  ;;  %v646_v34 = vstv %s1931_s24  ;;  %v750_v43 = vstv %s1971_s11  ;;  %s2157_s24 = sld [smem:[#allocation5 + $0x41]] }
  0xc3   : > { %v287_v33 = vmul.f32 0.16666667, %v285_v50  ;;  %v297_v57 = vmin.f32 %v295_v52, 6.0  ;;  %v648_v61 = vmul.f32 %v646_v34, %v1565_v1  ;;  %v668_v1 = vmul.f32 %v666_v4, %v1574_v8 }
  0xc4   : > { %v286_v27 = vmin.f32 %v284_v45, 6.0  ;;  %v296_v55 = vmin.f32 %v294_v51, 6.0  ;;  %v752_v45 = vmul.f32 %v1602_v24, %v750_v43  ;;  %v792_v51 = vmul.f32 %v1602_v24, %v790_v49 }
  0xc5   : > { %290 = vst.msk [vmem:[%s1904_s6] sm:$0xff] %vm289_vm1, %v287_v33  ;;  %v299_v21 = vmul.f32 0.16666667, %v297_v57  ;;  %v650_v63 = vadd.f32 %v648_v61, %v1784_v48  ;;  %v814_v33 = vstv %s1986_s18 }
  0xc6   : > { %v288_v53 = vmul.f32 0.16666667, %v286_v27  ;;  %v298_v58 = vmul.f32 0.16666667, %v296_v55 }
  0xc7   : > { %1119 = vst.msk [vmem:[%s1904_s6 + $0x48] sm:$0xff] %vm289_vm1, %v299_v21 }
  0xc8   : > { %291 = vst.msk [vmem:[%s1904_s6 + $0x8] sm:$0xff] %vm289_vm1, %v288_v53  ;;  %1118 = vst.msk [vmem:[%s1904_s6 + $0x40] sm:$0xff] %vm289_vm1, %v298_v58  ;;  %v816_v58 = vmul.f32 %v1627_v39, %v814_v33 }
  0xd2   : > { %v1955_v62 = vpop.permute.xlu1 %697  ;;  %v1959_v35 = vpop.permute.xlu0 %657 }
  0xd6   : > { %v700_v7 = vpop.permute.xlu1 %699  ;;  %v660_v11 = vpop.permute.xlu0 %659 }
  0xd7   : > { %v704_v22 = vadd.f32 %v700_v7, %v690_v29  ;;  %v664_v15 = vadd.f32 %v660_v11, %v650_v63 }
  0xd9   : > { %v710_v42 = vadd.f32 %v708_v6, %v704_v22  ;;  %v670_v23 = vadd.f32 %v668_v1, %v664_v15  ;;  %v856_v6 = vmul.f32 %v1627_v39, %v854_v28  ;;  %v834_v39 = vstv %s2013_s4 }
  0xda   : > { %v680_v17 = vpop.permute.xlu1 %679  ;;  %v1980_v37 = vpop.permute.xlu0 %677 }
  0xdb   : > { %v684_v8 = vadd.f32 %v680_v17, %v670_v23  ;;  %v836_v23 = vmul.f32 %v1658_v54, %v834_v39 }
  0xdd   : > { %v734_v40 = vadd.f32 %v732_v30, %v684_v8  ;;  %v647_v30 = vmul.f32 %v646_v34, %v1562_v0 }
  0xde   : > { %v720_v38 = vpop.permute.xlu1 %719  ;;  %v1988_v44 = vpop.permute.xlu0 %717 }
  0xdf   : > { %v724_v31 = vadd.f32 %v720_v38, %v710_v42 }
  0xe1   : > { %v774_v20 = vadd.f32 %v772_v25, %v724_v31  ;;  %v874_v25 = vstv %s2019_s22 }
  0xe2   : > { %v744_v46 = vpop.permute.xlu1 %743  ;;  %v1996_v50 = vpop.permute.xlu0 %741 }
  0xe3   : > { %v748_v16 = vadd.f32 %v744_v46, %v734_v40  ;;  %v649_v46 = vadd.f32 %v647_v30, %v1784_v48 }
  0xe5   : > { %v754_v27 = vadd.f32 %v752_v45, %v748_v16  ;;  %v687_v45 = vmul.f32 %v686_v59, %v1562_v0  ;;  %v667_v59 = vmul.f32 %v666_v4, %v1577_v10  ;;  %v898_v4 = vstv %s2044_s25 }
  0xe6   : > { %v784_v52 = vpop.permute.xlu1 %783  ;;  %v2002_v55 = vpop.permute.xlu0 %781 }
  0xe7   : > { %v788_v53 = vadd.f32 %v784_v52, %v774_v20  ;;  %v876_v20 = vmul.f32 %v1658_v54, %v874_v25  ;;  %v689_v54 = vadd.f32 %v687_v45, %v1766_v36  ;;  %v663_v52 = vadd.f32 %v1959_v35, %v649_v46 }
  0xe8   : > { %v771_v45 = vmul.f32 %v1591_v18, %v770_v14 }
  0xe9   : > { %v794_v57 = vadd.f32 %v792_v51, %v788_v53 }
  0xea   : > { %v764_v21 = vpop.permute.xlu1 %763  ;;  %v2008_v29 = vpop.permute.xlu0 %761 }
  0xeb   : > { %v768_v61 = vadd.f32 %v764_v21, %v754_v27  ;;  %v703_v21 = vadd.f32 %v1955_v62, %v689_v54  ;;  %v330_v62 = vstv %s2048_s26 }
  0xec   : > { %v332_v46 = vmul.f32 %v330_v62, %v1616_v32 }
  0xed   : > { %v818_v63 = vadd.f32 %v816_v58, %v768_v61  ;;  %v707_v58 = vmul.f32 %v706_v3, %v1577_v10  ;;  %v669_v61 = vadd.f32 %v667_v59, %v663_v52  ;;  %v900_v3 = vmul.f32 %v1690_v2, %v898_v4 }
  0xee   : > { %v804_v24 = vpop.permute.xlu1 %803  ;;  %v2015_v1 = vpop.permute.xlu0 %801  ;;  %v751_v52 = vmul.f32 %v1605_v26, %v750_v43 }
  0xef   : > { %v808_v7 = vadd.f32 %v804_v24, %v794_v57  ;;  %v683_v24 = vadd.f32 %v1980_v37, %v669_v61 }
  0xf1   : > { %v858_v22 = vadd.f32 %v856_v6, %v808_v7  ;;  %v731_v7 = vmul.f32 %v1591_v18, %v730_v13 }
  0xf2   : > { %v2017_v11 = vpop.permute.xlu1 %323  ;;  %v2021_v15 = vpop.permute.xlu0 %321 }
  0xf6   : > { %v2023_v42 = vpop.permute.xlu1 %343  ;;  %v2026_v17 = vpop.permute.xlu0 %341 }
  0xfa   : > { %v828_v8 = vpop.permute.xlu1 %827  ;;  %v2035_v40 = vpop.permute.xlu0 %825 }
  0xfb   : > { %v832_v38 = vadd.f32 %v828_v8, %v818_v63  ;;  %v310_v63 = vstv %s1121_s19  ;;  %v938_v8 = vstv %s2057_s15 }
  0xfc   : > { %v312_v10 = vmul.f32 %v310_v63, %v1616_v32  ;;  %v352_v32 = vstv %s2065_s21 }
  0xfd   : > { %v838_v31 = vadd.f32 %v836_v23, %v832_v38  ;;  %v311_v23 = vmul.f32 %v1562_v0, %v310_v63  ;;  %v334_v63 = vadd.f32 %v1766_v36, %v332_v46 }
  0xfe   : > { %v868_v16 = vpop.permute.xlu1 %867  ;;  %v2046_v27 = vpop.permute.xlu0 %865 }
  0xff   : > { %v872_v34 = vadd.f32 %v868_v16, %v858_v22  ;;  %v709_v22 = vadd.f32 %v707_v58, %v703_v21  ;;  %v314_v16 = vadd.f32 %v1784_v48, %v312_v10  ;;  %v313_v14 = vadd.f32 %v1784_v48, %v311_v23 }
 0x101   : > { %v878_v51 = vadd.f32 %v876_v20, %v872_v34  ;;  %v723_v13 = vadd.f32 %v1988_v44, %v709_v22  ;;  %v733_v20 = vadd.f32 %v731_v7, %v683_v24  ;;  %v331_v34 = vmul.f32 %v1562_v0, %v330_v62 }
 0x102   : > { %v2055_v53 = vpop.permute.xlu1 %365  ;;  %v2059_v57 = vpop.permute.xlu0 %363  ;;  %v791_v0 = vmul.f32 %v1605_v26, %v790_v49  ;;  %v328_v43 = vadd.f32 %v2017_v11, %v314_v16  ;;  %v327_v26 = vadd.f32 %v2021_v15, %v313_v14  ;;  %v353_v49 = vmul.f32 %v1591_v18, %v352_v32 }
 0x103   : > { %v747_v44 = vadd.f32 %v1996_v50, %v733_v20  ;;  %v773_v61 = vadd.f32 %v771_v45, %v723_v13  ;;  %v333_v48 = vadd.f32 %v1766_v36, %v331_v34  ;;  %v354_v50 = vmul.f32 %v1641_v47, %v352_v32 }
 0x104   : > { %v815_v36 = vmul.f32 %v1630_v41, %v814_v33  ;;  %v348_v22 = vadd.f32 %v2023_v42, %v334_v63  ;;  %v855_v33 = vmul.f32 %v1630_v41, %v854_v28  ;;  %v835_v28 = vmul.f32 %v1663_v56, %v834_v39 }
 0x105   : > { %v787_v24 = vadd.f32 %v2002_v55, %v773_v61  ;;  %v753_v7 = vadd.f32 %v751_v52, %v747_v44  ;;  %v356_v23 = vadd.f32 %v354_v50, %v328_v43  ;;  %v436_v52 = vstv %s2124_s30 }
 0x106   : > { %v2067_v35 = vpop.permute.xlu1 %385  ;;  %v2070_v6 = vpop.permute.xlu0 %383  ;;  %v875_v39 = vmul.f32 %v1663_v56, %v874_v25  ;;  %v437_v63 = vmul.f32 %v1698_v5, %v436_v52  ;;  %v899_v56 = vmul.f32 %v1698_v5, %v898_v4 }
 0x107   : > { %v767_v11 = vadd.f32 %v2008_v29, %v753_v7  ;;  %v793_v15 = vadd.f32 %v791_v0, %v787_v24  ;;  %v370_v29 = vadd.f32 %v2055_v53, %v356_v23 }
 0x109   : > { %v817_v46 = vadd.f32 %v815_v36, %v767_v11 }
 0x10a   : > { %v848_v30 = vpop.permute.xlu1 %847  ;;  %v2085_v38 = vpop.permute.xlu0 %845 }
 0x10b   : > { %v852_v37 = vadd.f32 %v848_v30, %v838_v31  ;;  %v940_v31 = vmul.f32 %v1690_v2, %v938_v8  ;;  %v372_v2 = vstv %s2076_s27  ;;  %v347_v30 = vadd.f32 %v2026_v17, %v333_v48 }
 0x10c   : > { %v374_v55 = vmul.f32 %v1641_v47, %v372_v2  ;;  %v373_v13 = vmul.f32 %v1591_v18, %v372_v2  ;;  %v807_v17 = vadd.f32 %v2015_v1, %v793_v15  ;;  %v414_v18 = vstv %s2114_s29 }
 0x10d   : > { %v2096_v54 = vadd.f32 %v900_v3, %v852_v37  ;;  %v394_v3 = vstv %s2092_s28  ;;  %v355_v37 = vadd.f32 %v353_v49, %v327_v26  ;;  %v416_v1 = vmul.f32 %v1681_v60, %v414_v18 }
 0x10e   : > { %v888_v59 = vpop.permute.xlu1 %887  ;;  %v2107_v21 = vpop.permute.xlu0 %885  ;;  %v396_v42 = vmul.f32 %v1681_v60, %v394_v3  ;;  %v395_v47 = vmul.f32 %v1630_v41, %v394_v3  ;;  %v376_v34 = vadd.f32 %v374_v55, %v348_v22  ;;  %v375_v44 = vadd.f32 %v373_v13, %v347_v30 }
 0x10f   : > { %v892_v58 = vadd.f32 %v888_v59, %v878_v51  ;;  %v369_v16 = vadd.f32 %v2059_v57, %v355_v37  ;;  %v857_v59 = vadd.f32 %v855_v33, %v807_v17  ;;  %v456_v48 = vstv %s2135_s5 }
 0x110   : > { %v390_v14 = vadd.f32 %v2067_v35, %v376_v34  ;;  %v398_v32 = vadd.f32 %v396_v42, %v370_v29  ;;  %v438_v35 = vmul.f32 %v1707_v9, %v436_v52  ;;  %v458_v49 = vmul.f32 %v1707_v9, %v456_v48 }
 0x111   : > { %v2119_v51 = vadd.f32 %v940_v31, %v892_v58  ;;  %v831_v31 = vadd.f32 %v2035_v40, %v817_v46  ;;  %v389_v58 = vadd.f32 %v2070_v6, %v375_v44  ;;  %v397_v61 = vadd.f32 %v395_v47, %v369_v16 }
 0x112   : > { %v408_v10 = vpop.permute.xlu1 %407  ;;  %v406_v62 = vpop.permute.xlu0 %405  ;;  %v415_v40 = vmul.f32 %v1630_v41, %v414_v18  ;;  %v871_v60 = vadd.f32 %v2046_v27, %v857_v59  ;;  %v418_v50 = vadd.f32 %v416_v1, %v390_v14  ;;  %v457_v27 = vmul.f32 %v1698_v5, %v456_v48 }
 0x113   : > { %v412_v0 = vadd.f32 %v408_v10, %v398_v32  ;;  %v837_v2 = vadd.f32 %v835_v28, %v831_v31  ;;  %v411_v43 = vadd.f32 %v406_v62, %v397_v61  ;;  %v918_v3 = vstv %s2151_s16 }
 0x114   : > { %v417_v7 = vadd.f32 %v415_v40, %v389_v58  ;;  %v877_v10 = vadd.f32 %v875_v39, %v871_v60  ;;  %v939_v22 = vmul.f32 %v1698_v5, %v938_v8  ;;  %v958_v30 = vstv %s2157_s24 }
 0x115   : > { %v851_v24 = vadd.f32 %v2085_v38, %v837_v2  ;;  %v440_v26 = vadd.f32 %v438_v35, %v412_v0  ;;  %v439_v36 = vadd.f32 %v437_v63, %v411_v43 }
 0x116   : > { %v428_v20 = vpop.permute.xlu1 %427  ;;  %v426_v45 = vpop.permute.xlu0 %425  ;;  %v891_v55 = vadd.f32 %v2107_v21, %v877_v10  ;;  %v960_v21 = vmul.f32 %v1711_v12, %v958_v30 }
 0x117   : > { %v432_v25 = vadd.f32 %v428_v20, %v418_v50  ;;  %v431_v62 = vadd.f32 %v426_v45, %v417_v7  ;;  %v901_v4 = vadd.f32 %v899_v56, %v851_v24  ;;  %v920_v20 = vmul.f32 %v1711_v12, %v918_v3 }
 0x118   : > { %v919_v45 = vmul.f32 %v1718_v19, %v918_v3  ;;  %v941_v46 = vadd.f32 %v939_v22, %v891_v55 }
 0x119   : > { %v460_v13 = vadd.f32 %v458_v49, %v432_v25  ;;  %v459_v47 = vadd.f32 %v457_v27, %v431_v62 }
 0x11a   : > { %v912_v53 = vpop.permute.xlu1 %911  ;;  %v910_v57 = vpop.permute.xlu0 %909 }
 0x11b   : > { %v916_v37 = vadd.f32 %v912_v53, %v2096_v54  ;;  %v915_v33 = vadd.f32 %v910_v57, %v901_v4  ;;  %v959_v54 = vmul.f32 %v1718_v19, %v958_v30 }
 0x11d   : > { %v922_v28 = vadd.f32 %v920_v20, %v916_v37  ;;  %v921_v1 = vadd.f32 %v919_v45, %v915_v33 }
 0x11e   : > { %v952_v6 = vpop.permute.xlu1 %951  ;;  %v950_v41 = vpop.permute.xlu0 %949 }
 0x11f   : > { %v956_v34 = vadd.f32 %v952_v6, %v2119_v51  ;;  %v955_v53 = vadd.f32 %v950_v41, %v941_v46 }
 0x121   : > { %v962_v0 = vadd.f32 %v960_v21, %v956_v34  ;;  %v961_v2 = vadd.f32 %v959_v54, %v955_v53 }
 0x122   : > { %v450_v11 = vpop.permute.xlu1 %449  ;;  %v448_v23 = vpop.permute.xlu0 %447 }
 0x123   : > { %v454_v38 = vadd.f32 %v450_v11, %v440_v26  ;;  %v453_v15 = vadd.f32 %v448_v23, %v439_v36 }
 0x125   : > { %v476_v9 = vadd.f32 3.0, %v454_v38  ;;  %v475_v29 = vadd.f32 3.0, %v453_v15 }
 0x126   : > { %v470_v42 = vpop.permute.xlu1 %469  ;;  %v468_v17 = vpop.permute.xlu0 %467 }
 0x127   : > { %v478_v5 = vmax.f32 %v476_v9, 0.0  ;;  %v474_v8 = vadd.f32 %v470_v42, %v460_v13  ;;  %v477_v16 = vmax.f32 %v475_v29, 0.0  ;;  %v473_v18 = vadd.f32 %v468_v17, %v459_v47 }
 0x129   : > { %v480_v31 = vmin.f32 %v478_v5, 6.0  ;;  %v488_v44 = vadd.f32 3.0, %v474_v8  ;;  %v479_v52 = vmin.f32 %v477_v16, 6.0  ;;  %v487_v14 = vadd.f32 3.0, %v473_v18 }
 0x12a   : > { %v932_v32 = vpop.permute.xlu1 %931  ;;  %v930_v58 = vpop.permute.xlu0 %929 }
 0x12b   : > { %v482_v57 = vmul.f32 0.16666667, %v480_v31  ;;  %v490_v59 = vmax.f32 %v488_v44, 0.0  ;;  %v936_v12 = vadd.f32 %v932_v32, %v922_v28  ;;  %v481_v61 = vmul.f32 0.16666667, %v479_v52 }
 0x12c   : > { %v489_v40 = vmax.f32 %v487_v14, 0.0  ;;  %v935_v39 = vadd.f32 %v930_v58, %v921_v1 }
 0x12d   : > { %1144 = vst.msk [vmem:[%s1904_s6 + $0x18] sm:$0xff] %vm484_vm2, %v482_v57  ;;  %v492_v19 = vmin.f32 %v490_v59, 6.0  ;;  %v978_v51 = vadd.f32 3.0, %v936_v12  ;;  %1143 = vst.msk [vmem:[%s1904_s6 + $0x10] sm:$0xff] %vm484_vm2, %v481_v61 }
 0x12e   : > { %v491_v35 = vmin.f32 %v489_v40, 6.0  ;;  %v977_v63 = vadd.f32 3.0, %v935_v39  ;;  %v972_v60 = vpop.permute.xlu1 %971  ;;  %v970_v50 = vpop.permute.xlu0 %969 }
 0x12f   : > { %v494_v43 = vmul.f32 0.16666667, %v492_v19  ;;  %v980_v6 = vmax.f32 %v978_v51, 0.0  ;;  %v976_v48 = vadd.f32 %v972_v60, %v962_v0  ;;  %v975_v7 = vadd.f32 %v970_v50, %v961_v2 }
 0x130   : > { %v493_v41 = vmul.f32 0.16666667, %v491_v35  ;;  %v979_v24 = vmax.f32 %v977_v63, 0.0 }
 0x131   : > { %1146 = vst.msk [vmem:[%s1904_s6 + $0x58] sm:$0xff] %vm484_vm2, %v494_v43  ;;  %v982_v56 = vmin.f32 %v980_v6, 6.0  ;;  %v990_v25 = vadd.f32 3.0, %v976_v48  ;;  %v989_v49 = vadd.f32 3.0, %v975_v7 }
 0x132   : > { %1145 = vst.msk [vmem:[%s1904_s6 + $0x50] sm:$0xff] %vm484_vm2, %v493_v41  ;;  %v981_v26 = vmin.f32 %v979_v24, 6.0 }
 0x133   : > { %v984_v27 = vmul.f32 0.16666667, %v982_v56  ;;  %v992_v10 = vmax.f32 %v990_v25, 0.0  ;;  %v991_v11 = vmax.f32 %v989_v49, 0.0 }
 0x134   : > { %v983_v62 = vmul.f32 0.16666667, %v981_v26 }
 0x135   : > { %1225 = vst.msk [vmem:[%s1904_s6 + $0x38] sm:$0x7f] %vm987_vm3, %v984_v27  ;;  %v994_v36 = vmin.f32 %v992_v10, 6.0  ;;  %v993_v3 = vmin.f32 %v991_v11, 6.0 }
 0x136   : > { %1224 = vst.msk [vmem:[%s1904_s6 + $0x30] sm:$0xff] %vm484_vm2, %v983_v62 }
 0x137   : > { %v996_v22 = vmul.f32 0.16666667, %v994_v36  ;;  %v995_v38 = vmul.f32 0.16666667, %v993_v3 }
 0x139   : > { %1227 = vst.msk [vmem:[%s1904_s6 + $0x78] sm:$0x7f] %vm987_vm3, %v996_v22 }
 0x13a   : > { %1226 = vst.msk [vmem:[%s1904_s6 + $0x70] sm:$0xff] %vm484_vm2, %v995_v38 }
 0x13b PF: > { %p15_p11 = scmp.ge.s32.totalorder %s1447_s17, 4   ;;  %s2231_s12 = smov %s1389_s13 }
 0x13c   : > { %s2232_s13 = smov %s1393_s14  ;;  %s2233_s14 = smov %s1457_s20 }
 0x13d   : > { %s2234_s15 = smov %s1447_s17  ;;  %17 = sbr.rel (!%p15_p11) target bundleno = 5 (0x5), region = 91 }
 0x144   :  { %1021 = vsyncpa [#allocation3], 1 }
 0x145   :  { %1023 = vsyncpa [#allocation3 + $0x1], 1 }
 0x146   :  { %1024 = vsyncpa [#allocation4], 1 }
 0x147   :  { %1026 = vsyncpa [#allocation4 + $0x1], 1 }
 0x148   :  { %1027 = vsyncpa [#allocation7], 1 }

</bundles_post_ra>
